<compile_context>
chip_gen: v5e
topology: v5e:2x2
jax: 0.10.0
libtpu: 0.0.40
codegen_flags: <defaults>
</compile_context>

<pallas_src>
import jax
import jax.numpy as jnp
import numpy as np
from jax.experimental import pallas as pl
from jax.experimental.pallas import tpu as pltpu

B = 2            # batch
B_PAD = 8        # batch padded to a full sublane group
H = W = 28       # spatial (forced by fc1 in_features = 2028 = 3*26*26, C_in=1)
C_OUT = 3
KH = KW = 3
OH = OW = 26
FLAT = C_OUT * OH * OW       # 2028, torch.flatten order: f = c*676 + oh*26 + ow
X_LANES = 896                # 28*28 = 784 image lanes, padded to 7*128
K_SLAB = 768                 # fc1 rows per conv channel (>= 725+1 valid, = 6*128)
HID = 128
NCLS = 10
NCLS_PAD = 128               # logits padded to a full 128-lane vreg


# ---------------------------------------------------------------------------
# One fused kernel: conv3x3(1->3) + bias + ReLU + (implicit flatten) + fc1
# + ReLU + fc2 + log_softmax.  The image arrives lane-flattened (B_PAD, 896):
# lane k = h*28 + w, so conv tap (dh, dw) is a lane roll by -(dh*28 + dw).
# ---------------------------------------------------------------------------
def fused_cnn_kernel(x_ref, wc_ref, bc_ref, w1_ref, b1_ref, w2_ref, b2_ref,
                     out_ref):
    x_flat = x_ref[...]                               # (B_PAD, 896) f32

    # Hoist all SMEM scalar reads out of the unrolled FMA sequence.
    wsc = [wc_ref[i] for i in range(C_OUT * KH * KW)]
    bsc = [bc_ref[c] for c in range(C_OUT)]

    # Conv accumulators in the lane-flattened layout (lane j = oh*28 + ow).
    # Each of the 9 taps is computed ONCE as a single lane roll (XLU) and
    # reused by all 3 output channels; valid output lanes (oh,ow < 26) never
    # wrap (j + shift <= 783 < 896), invalid lanes later hit zero w1 rows.
    accs = [jnp.full((B_PAD, X_LANES), bsc[c], dtype=jnp.float32)
            for c in range(C_OUT)]
    taps_idx = [(dh, dw) for dh in range(KH) for dw in range(KW)]
    for t, (dh, dw) in enumerate(taps_idx):
        s = dh * W + dw
        tap = x_flat if s == 0 else pltpu.roll(x_flat, shift=X_LANES - s, axis=1)
        for c in range(C_OUT):
            accs[c] = accs[c] + wsc[c * (KH * KW) + t] * tap

    # fc1 on the MXU, accumulated per conv channel (bf16 operands, f32 acc).
    # No flat scratch, no misaligned stores: the slab is already lane-dense.
    h1 = jnp.zeros((B_PAD, HID), jnp.float32)
    for c in range(C_OUT):
        slab = jnp.maximum(accs[c], 0.0)              # ReLU, f32 on the VPU
        slab = slab[:, :K_SLAB].astype(jnp.bfloat16)  # 128-aligned lane slice
        h1 = h1 + jnp.dot(slab, w1_ref[c],
                          preferred_element_type=jnp.float32)
    h1 = jnp.maximum(h1 + b1_ref[...], 0.0)

    # fc2 into a 128-lane padded logits buffer (pad columns are exactly 0).
    logits = jnp.dot(h1, w2_ref[...],
                     preferred_element_type=jnp.float32) + b2_ref[...]

    # log_softmax over the 10 valid classes; pads masked out of the reductions.
    col = jax.lax.broadcasted_iota(jnp.int32, (B_PAD, NCLS_PAD), 1)
    valid = col < NCLS
    m = jnp.max(jnp.where(valid, logits, jnp.float32(-1e30)),
                axis=-1, keepdims=True)
    sft = logits - m
    e = jnp.where(valid, jnp.exp(sft), 0.0)
    lse = jnp.log(jnp.sum(e, axis=-1, keepdims=True))
    out_ref[...] = sft - lse                          # full unmasked 128-lane store


@jax.jit
def cnn_forward(x, prepared_params):
    """x: (B, 1, 28, 28) float32 NCHW (PyTorch convention). Returns (B, 10)."""
    wc_flat, bc, w1p, b1, w2p, b2p = prepared_params
    # (B,1,28,28) -> lane-flattened (B_PAD, 896): lane k = h*28 + w, zero tail,
    # batch padded to 8 sublanes.  Pure layout glue on a 6 KB tensor.
    x_lanes = (jnp.zeros((B_PAD, X_LANES), jnp.float32)
               .at[:B, :H * W].set(x.reshape(B, H * W)))

    out_pad = pl.pallas_call(
        fused_cnn_kernel,
        out_shape=jax.ShapeDtypeStruct((B_PAD, NCLS_PAD), jnp.float32),
        in_specs=[
            pl.BlockSpec(memory_space=pltpu.MemorySpace.VMEM),   # x (8, 896)
            pl.BlockSpec(memory_space=pltpu.MemorySpace.SMEM),   # conv weight (27,)
            pl.BlockSpec(memory_space=pltpu.MemorySpace.SMEM),   # conv bias (3,)
            pl.BlockSpec(memory_space=pltpu.MemorySpace.VMEM),   # w1 bf16 (3,768,128)
            pl.BlockSpec(memory_space=pltpu.MemorySpace.VMEM),   # b1 (1,128)
            pl.BlockSpec(memory_space=pltpu.MemorySpace.VMEM),   # w2 (128,128)
            pl.BlockSpec(memory_space=pltpu.MemorySpace.VMEM),   # b2 (1,128)
        ],
        out_specs=pl.BlockSpec(memory_space=pltpu.MemorySpace.VMEM),
    )(x_lanes, wc_flat, bc, w1p, b1, w2p, b2p)
    return out_pad[:B, :NCLS]


def init_params(key):
    k = jax.random.split(key, 6)
    # Same logical shapes as the nn.Module; fc weights stored pre-transposed.
    wc = 0.2 * jax.random.normal(k[0], (C_OUT, 1, KH, KW), jnp.float32)  # conv1.weight
    bc = 0.1 * jax.random.normal(k[1], (C_OUT,), jnp.float32)            # conv1.bias
    w1 = 0.05 * jax.random.normal(k[2], (FLAT, HID), jnp.float32)        # fc1.weight.T
    b1 = 0.05 * jax.random.normal(k[3], (1, HID), jnp.float32)           # fc1.bias
    w2 = 0.05 * jax.random.normal(k[4], (HID, NCLS), jnp.float32)        # fc2.weight.T
    b2 = 0.05 * jax.random.normal(k[5], (1, NCLS), jnp.float32)          # fc2.bias
    return wc, bc, w1, b1, w2, b2


def prepare_params(params):
    """One-off layout/precision prep (init-time JAX glue, not per-call work)."""
    wc, bc, w1, b1, w2, b2 = params
    wc_flat = wc.reshape(-1)                                             # (27,)
    # Re-permute fc1 rows from torch.flatten order (f = c*676 + oh*26 + ow) to
    # the kernel's per-channel lane layout (j = oh*28 + ow), zero-padding the
    # invalid lanes (ow >= 26 / oh >= 26).  Rows 768..783 all have oh = 27 and
    # are therefore zero, so truncating to K_SLAB = 768 rows is exact.
    w1r = w1.reshape(C_OUT, OH, OW, HID)
    w1p = (jnp.zeros((C_OUT, H, W, HID), jnp.float32)
           .at[:, :OH, :OW, :].set(w1r)
           .reshape(C_OUT, H * W, HID)[:, :K_SLAB, :]
           .astype(jnp.bfloat16))                                        # (3,768,128)
    w2p = jnp.zeros((HID, NCLS_PAD), jnp.float32).at[:, :NCLS].set(w2)   # padded N
    b2p = jnp.zeros((1, NCLS_PAD), jnp.float32).at[:, :NCLS].set(b2)
    return wc_flat, bc, w1p, b1, w2p, b2p


def cnn_reference(x, params):
    """Plain-JAX reference of the PyTorch forward (same bf16 fc1 numerics)."""
    wc, bc, w1, b1, w2, b2 = params
    x2d = x.reshape(B, H, W)
    conv = jnp.zeros((B, C_OUT, OH, OW), jnp.float32)
    for c in range(C_OUT):
        acc = jnp.full((B, OH, OW), bc[c])
        for dh in range(KH):
            for dw in range(KW):
                acc = acc + wc[c, 0, dh, dw] * x2d[:, dh:dh + OH, dw:dw + OW]
        conv = conv.at[:, c].set(acc)
    conv = jnp.maximum(conv, 0.0)
    flat = conv.reshape(B, FLAT)
    h = jnp.maximum(
        jnp.dot(flat.astype(jnp.bfloat16), w1.astype(jnp.bfloat16),
                preferred_element_type=jnp.float32) + b1, 0.0)
    logits = jnp.dot(h, w2, preferred_element_type=jnp.float32) + b2
    return jax.nn.log_softmax(logits, axis=1)


if __name__ == "__main__":
    key = jax.random.PRNGKey(0)
    kx, kp = jax.random.split(key)
    x = jax.random.normal(kx, (B, 1, H, W), jnp.float32)   # NCHW, like PyTorch
    raw_params = init_params(kp)
    params = prepare_params(raw_params)

    out = jax.block_until_ready(cnn_forward(x, params))
    ref = jax.block_until_ready(cnn_reference(x, raw_params))

    assert out.shape == (B, NCLS)
    np.testing.assert_allclose(np.asarray(out), np.asarray(ref),
                               rtol=2e-3, atol=2e-3)
    print("KERNEL_OK")
</pallas_src>

<mosaic_0001>
module attributes {stable_mosaic.version = 11 : i64} {
  func.func @fused_cnn_kernel(%arg0: memref<8x896xf32, #tpu.memory_space<vmem>>, %arg1: memref<27xf32, #tpu.memory_space<smem>>, %arg2: memref<3xf32, #tpu.memory_space<smem>>, %arg3: memref<3x768x128xbf16, #tpu.memory_space<vmem>>, %arg4: memref<1x128xf32, #tpu.memory_space<vmem>>, %arg5: memref<128x128xf32, #tpu.memory_space<vmem>>, %arg6: memref<1x128xf32, #tpu.memory_space<vmem>>, %arg7: memref<8x128xf32, #tpu.memory_space<vmem>>) attributes {dimension_semantics = [], scalar_prefetch = 0 : i64, scratch_operands = 0 : i64, tpu.core_type = #tpu.core_type<tc>} {
    %c0 = arith.constant 0 : index
    %c0_0 = arith.constant 0 : index
    %0 = vector.load %arg0[%c0, %c0_0] : memref<8x896xf32, #tpu.memory_space<vmem>>, vector<8x896xf32>
    %c0_1 = arith.constant 0 : index
    %1 = memref.load %arg1[%c0_1] : memref<27xf32, #tpu.memory_space<smem>>
    %c1 = arith.constant 1 : index
    %2 = memref.load %arg1[%c1] : memref<27xf32, #tpu.memory_space<smem>>
    %c2 = arith.constant 2 : index
    %3 = memref.load %arg1[%c2] : memref<27xf32, #tpu.memory_space<smem>>
    %c3 = arith.constant 3 : index
    %4 = memref.load %arg1[%c3] : memref<27xf32, #tpu.memory_space<smem>>
    %c4 = arith.constant 4 : index
    %5 = memref.load %arg1[%c4] : memref<27xf32, #tpu.memory_space<smem>>
    %c5 = arith.constant 5 : index
    %6 = memref.load %arg1[%c5] : memref<27xf32, #tpu.memory_space<smem>>
    %c6 = arith.constant 6 : index
    %7 = memref.load %arg1[%c6] : memref<27xf32, #tpu.memory_space<smem>>
    %c7 = arith.constant 7 : index
    %8 = memref.load %arg1[%c7] : memref<27xf32, #tpu.memory_space<smem>>
    %c8 = arith.constant 8 : index
    %9 = memref.load %arg1[%c8] : memref<27xf32, #tpu.memory_space<smem>>
    %c9 = arith.constant 9 : index
    %10 = memref.load %arg1[%c9] : memref<27xf32, #tpu.memory_space<smem>>
    %c10 = arith.constant 10 : index
    %11 = memref.load %arg1[%c10] : memref<27xf32, #tpu.memory_space<smem>>
    %c11 = arith.constant 11 : index
    %12 = memref.load %arg1[%c11] : memref<27xf32, #tpu.memory_space<smem>>
    %c12 = arith.constant 12 : index
    %13 = memref.load %arg1[%c12] : memref<27xf32, #tpu.memory_space<smem>>
    %c13 = arith.constant 13 : index
    %14 = memref.load %arg1[%c13] : memref<27xf32, #tpu.memory_space<smem>>
    %c14 = arith.constant 14 : index
    %15 = memref.load %arg1[%c14] : memref<27xf32, #tpu.memory_space<smem>>
    %c15 = arith.constant 15 : index
    %16 = memref.load %arg1[%c15] : memref<27xf32, #tpu.memory_space<smem>>
    %c16 = arith.constant 16 : index
    %17 = memref.load %arg1[%c16] : memref<27xf32, #tpu.memory_space<smem>>
    %c17 = arith.constant 17 : index
    %18 = memref.load %arg1[%c17] : memref<27xf32, #tpu.memory_space<smem>>
    %c18 = arith.constant 18 : index
    %19 = memref.load %arg1[%c18] : memref<27xf32, #tpu.memory_space<smem>>
    %c19 = arith.constant 19 : index
    %20 = memref.load %arg1[%c19] : memref<27xf32, #tpu.memory_space<smem>>
    %c20 = arith.constant 20 : index
    %21 = memref.load %arg1[%c20] : memref<27xf32, #tpu.memory_space<smem>>
    %c21 = arith.constant 21 : index
    %22 = memref.load %arg1[%c21] : memref<27xf32, #tpu.memory_space<smem>>
    %c22 = arith.constant 22 : index
    %23 = memref.load %arg1[%c22] : memref<27xf32, #tpu.memory_space<smem>>
    %c23 = arith.constant 23 : index
    %24 = memref.load %arg1[%c23] : memref<27xf32, #tpu.memory_space<smem>>
    %c24 = arith.constant 24 : index
    %25 = memref.load %arg1[%c24] : memref<27xf32, #tpu.memory_space<smem>>
    %c25 = arith.constant 25 : index
    %26 = memref.load %arg1[%c25] : memref<27xf32, #tpu.memory_space<smem>>
    %c26 = arith.constant 26 : index
    %27 = memref.load %arg1[%c26] : memref<27xf32, #tpu.memory_space<smem>>
    %c0_2 = arith.constant 0 : index
    %28 = memref.load %arg2[%c0_2] : memref<3xf32, #tpu.memory_space<smem>>
    %c1_3 = arith.constant 1 : index
    %29 = memref.load %arg2[%c1_3] : memref<3xf32, #tpu.memory_space<smem>>
    %c2_4 = arith.constant 2 : index
    %30 = memref.load %arg2[%c2_4] : memref<3xf32, #tpu.memory_space<smem>>
    %31 = vector.broadcast %28 : f32 to vector<8x896xf32>
    %32 = vector.broadcast %29 : f32 to vector<8x896xf32>
    %33 = vector.broadcast %30 : f32 to vector<8x896xf32>
    %34 = vector.broadcast %1 : f32 to vector<8x896xf32>
    %35 = arith.mulf %34, %0 : vector<8x896xf32>
    %36 = arith.addf %31, %35 : vector<8x896xf32>
    %37 = vector.broadcast %10 : f32 to vector<8x896xf32>
    %38 = arith.mulf %37, %0 : vector<8x896xf32>
    %39 = arith.addf %32, %38 : vector<8x896xf32>
    %40 = vector.broadcast %19 : f32 to vector<8x896xf32>
    %41 = arith.mulf %40, %0 : vector<8x896xf32>
    %42 = arith.addf %33, %41 : vector<8x896xf32>
    %c895_i32 = arith.constant 895 : i32
    %43 = tpu.dynamic_rotate %0 by %c895_i32 dim 1 : vector<8x896xf32>, i32 -> vector<8x896xf32>
    %44 = vector.broadcast %2 : f32 to vector<8x896xf32>
    %45 = arith.mulf %44, %43 : vector<8x896xf32>
    %46 = arith.addf %36, %45 : vector<8x896xf32>
    %47 = vector.broadcast %11 : f32 to vector<8x896xf32>
    %48 = arith.mulf %47, %43 : vector<8x896xf32>
    %49 = arith.addf %39, %48 : vector<8x896xf32>
    %50 = vector.broadcast %20 : f32 to vector<8x896xf32>
    %51 = arith.mulf %50, %43 : vector<8x896xf32>
    %52 = arith.addf %42, %51 : vector<8x896xf32>
    %c894_i32 = arith.constant 894 : i32
    %53 = tpu.dynamic_rotate %0 by %c894_i32 dim 1 : vector<8x896xf32>, i32 -> vector<8x896xf32>
    %54 = vector.broadcast %3 : f32 to vector<8x896xf32>
    %55 = arith.mulf %54, %53 : vector<8x896xf32>
    %56 = arith.addf %46, %55 : vector<8x896xf32>
    %57 = vector.broadcast %12 : f32 to vector<8x896xf32>
    %58 = arith.mulf %57, %53 : vector<8x896xf32>
    %59 = arith.addf %49, %58 : vector<8x896xf32>
    %60 = vector.broadcast %21 : f32 to vector<8x896xf32>
    %61 = arith.mulf %60, %53 : vector<8x896xf32>
    %62 = arith.addf %52, %61 : vector<8x896xf32>
    %c868_i32 = arith.constant 868 : i32
    %63 = tpu.dynamic_rotate %0 by %c868_i32 dim 1 : vector<8x896xf32>, i32 -> vector<8x896xf32>
    %64 = vector.broadcast %4 : f32 to vector<8x896xf32>
    %65 = arith.mulf %64, %63 : vector<8x896xf32>
    %66 = arith.addf %56, %65 : vector<8x896xf32>
    %67 = vector.broadcast %13 : f32 to vector<8x896xf32>
    %68 = arith.mulf %67, %63 : vector<8x896xf32>
    %69 = arith.addf %59, %68 : vector<8x896xf32>
    %70 = vector.broadcast %22 : f32 to vector<8x896xf32>
    %71 = arith.mulf %70, %63 : vector<8x896xf32>
    %72 = arith.addf %62, %71 : vector<8x896xf32>
    %c867_i32 = arith.constant 867 : i32
    %73 = tpu.dynamic_rotate %0 by %c867_i32 dim 1 : vector<8x896xf32>, i32 -> vector<8x896xf32>
    %74 = vector.broadcast %5 : f32 to vector<8x896xf32>
    %75 = arith.mulf %74, %73 : vector<8x896xf32>
    %76 = arith.addf %66, %75 : vector<8x896xf32>
    %77 = vector.broadcast %14 : f32 to vector<8x896xf32>
    %78 = arith.mulf %77, %73 : vector<8x896xf32>
    %79 = arith.addf %69, %78 : vector<8x896xf32>
    %80 = vector.broadcast %23 : f32 to vector<8x896xf32>
    %81 = arith.mulf %80, %73 : vector<8x896xf32>
    %82 = arith.addf %72, %81 : vector<8x896xf32>
    %c866_i32 = arith.constant 866 : i32
    %83 = tpu.dynamic_rotate %0 by %c866_i32 dim 1 : vector<8x896xf32>, i32 -> vector<8x896xf32>
    %84 = vector.broadcast %6 : f32 to vector<8x896xf32>
    %85 = arith.mulf %84, %83 : vector<8x896xf32>
    %86 = arith.addf %76, %85 : vector<8x896xf32>
    %87 = vector.broadcast %15 : f32 to vector<8x896xf32>
    %88 = arith.mulf %87, %83 : vector<8x896xf32>
    %89 = arith.addf %79, %88 : vector<8x896xf32>
    %90 = vector.broadcast %24 : f32 to vector<8x896xf32>
    %91 = arith.mulf %90, %83 : vector<8x896xf32>
    %92 = arith.addf %82, %91 : vector<8x896xf32>
    %c840_i32 = arith.constant 840 : i32
    %93 = tpu.dynamic_rotate %0 by %c840_i32 dim 1 : vector<8x896xf32>, i32 -> vector<8x896xf32>
    %94 = vector.broadcast %7 : f32 to vector<8x896xf32>
    %95 = arith.mulf %94, %93 : vector<8x896xf32>
    %96 = arith.addf %86, %95 : vector<8x896xf32>
    %97 = vector.broadcast %16 : f32 to vector<8x896xf32>
    %98 = arith.mulf %97, %93 : vector<8x896xf32>
    %99 = arith.addf %89, %98 : vector<8x896xf32>
    %100 = vector.broadcast %25 : f32 to vector<8x896xf32>
    %101 = arith.mulf %100, %93 : vector<8x896xf32>
    %102 = arith.addf %92, %101 : vector<8x896xf32>
    %c839_i32 = arith.constant 839 : i32
    %103 = tpu.dynamic_rotate %0 by %c839_i32 dim 1 : vector<8x896xf32>, i32 -> vector<8x896xf32>
    %104 = vector.broadcast %8 : f32 to vector<8x896xf32>
    %105 = arith.mulf %104, %103 : vector<8x896xf32>
    %106 = arith.addf %96, %105 : vector<8x896xf32>
    %107 = vector.broadcast %17 : f32 to vector<8x896xf32>
    %108 = arith.mulf %107, %103 : vector<8x896xf32>
    %109 = arith.addf %99, %108 : vector<8x896xf32>
    %110 = vector.broadcast %26 : f32 to vector<8x896xf32>
    %111 = arith.mulf %110, %103 : vector<8x896xf32>
    %112 = arith.addf %102, %111 : vector<8x896xf32>
    %c838_i32 = arith.constant 838 : i32
    %113 = tpu.dynamic_rotate %0 by %c838_i32 dim 1 : vector<8x896xf32>, i32 -> vector<8x896xf32>
    %114 = vector.broadcast %9 : f32 to vector<8x896xf32>
    %115 = arith.mulf %114, %113 : vector<8x896xf32>
    %116 = arith.addf %106, %115 : vector<8x896xf32>
    %117 = vector.broadcast %18 : f32 to vector<8x896xf32>
    %118 = arith.mulf %117, %113 : vector<8x896xf32>
    %119 = arith.addf %109, %118 : vector<8x896xf32>
    %120 = vector.broadcast %27 : f32 to vector<8x896xf32>
    %121 = arith.mulf %120, %113 : vector<8x896xf32>
    %122 = arith.addf %112, %121 : vector<8x896xf32>
    %cst = arith.constant 0.000000e+00 : f32
    %123 = vector.broadcast %cst : f32 to vector<8x128xf32>
    %cst_5 = arith.constant 0.000000e+00 : f32
    %124 = vector.broadcast %cst_5 : f32 to vector<8x896xf32>
    %125 = arith.maximumf %116, %124 : vector<8x896xf32>
    %126 = vector.extract_strided_slice %125 {offsets = [0, 0], sizes = [8, 768], strides = [1, 1]} : vector<8x896xf32> to vector<8x768xf32>
    %127 = arith.truncf %126 : vector<8x768xf32> to vector<8x768xbf16>
    %c0_6 = arith.constant 0 : index
    %c0_7 = arith.constant 0 : index
    %c0_8 = arith.constant 0 : index
    %128 = vector.load %arg3[%c0_6, %c0_7, %c0_8] : memref<3x768x128xbf16, #tpu.memory_space<vmem>>, vector<1x768x128xbf16>
    %129 = vector.shape_cast %128 : vector<1x768x128xbf16> to vector<768x128xbf16>
    %cst_9 = arith.constant dense<0.000000e+00> : vector<8x128xf32>
    %130 = tpu.matmul %127, %129, %cst_9 {dimension_numbers = #tpu.dot_dimension_numbers<[1], [0], [0], [1], [0, 0, 1, 1], [], []>} : vector<8x768xbf16>, vector<768x128xbf16>, vector<8x128xf32> -> vector<8x128xf32>
    %131 = arith.addf %123, %130 : vector<8x128xf32>
    %cst_10 = arith.constant 0.000000e+00 : f32
    %132 = vector.broadcast %cst_10 : f32 to vector<8x896xf32>
    %133 = arith.maximumf %119, %132 : vector<8x896xf32>
    %134 = vector.extract_strided_slice %133 {offsets = [0, 0], sizes = [8, 768], strides = [1, 1]} : vector<8x896xf32> to vector<8x768xf32>
    %135 = arith.truncf %134 : vector<8x768xf32> to vector<8x768xbf16>
    %c1_11 = arith.constant 1 : index
    %c0_12 = arith.constant 0 : index
    %c0_13 = arith.constant 0 : index
    %136 = vector.load %arg3[%c1_11, %c0_12, %c0_13] : memref<3x768x128xbf16, #tpu.memory_space<vmem>>, vector<1x768x128xbf16>
    %137 = vector.shape_cast %136 : vector<1x768x128xbf16> to vector<768x128xbf16>
    %cst_14 = arith.constant dense<0.000000e+00> : vector<8x128xf32>
    %138 = tpu.matmul %135, %137, %cst_14 {dimension_numbers = #tpu.dot_dimension_numbers<[1], [0], [0], [1], [0, 0, 1, 1], [], []>} : vector<8x768xbf16>, vector<768x128xbf16>, vector<8x128xf32> -> vector<8x128xf32>
    %139 = arith.addf %131, %138 : vector<8x128xf32>
    %cst_15 = arith.constant 0.000000e+00 : f32
    %140 = vector.broadcast %cst_15 : f32 to vector<8x896xf32>
    %141 = arith.maximumf %122, %140 : vector<8x896xf32>
    %142 = vector.extract_strided_slice %141 {offsets = [0, 0], sizes = [8, 768], strides = [1, 1]} : vector<8x896xf32> to vector<8x768xf32>
    %143 = arith.truncf %142 : vector<8x768xf32> to vector<8x768xbf16>
    %c2_16 = arith.constant 2 : index
    %c0_17 = arith.constant 0 : index
    %c0_18 = arith.constant 0 : index
    %144 = vector.load %arg3[%c2_16, %c0_17, %c0_18] : memref<3x768x128xbf16, #tpu.memory_space<vmem>>, vector<1x768x128xbf16>
    %145 = vector.shape_cast %144 : vector<1x768x128xbf16> to vector<768x128xbf16>
    %cst_19 = arith.constant dense<0.000000e+00> : vector<8x128xf32>
    %146 = tpu.matmul %143, %145, %cst_19 {dimension_numbers = #tpu.dot_dimension_numbers<[1], [0], [0], [1], [0, 0, 1, 1], [], []>} : vector<8x768xbf16>, vector<768x128xbf16>, vector<8x128xf32> -> vector<8x128xf32>
    %147 = arith.addf %139, %146 : vector<8x128xf32>
    %c0_20 = arith.constant 0 : index
    %c0_21 = arith.constant 0 : index
    %148 = vector.load %arg4[%c0_20, %c0_21] : memref<1x128xf32, #tpu.memory_space<vmem>>, vector<1x128xf32>
    %149 = vector.broadcast %148 : vector<1x128xf32> to vector<8x128xf32>
    %150 = arith.addf %147, %149 : vector<8x128xf32>
    %cst_22 = arith.constant 0.000000e+00 : f32
    %151 = vector.broadcast %cst_22 : f32 to vector<8x128xf32>
    %152 = arith.maximumf %150, %151 : vector<8x128xf32>
    %c0_23 = arith.constant 0 : index
    %c0_24 = arith.constant 0 : index
    %153 = vector.load %arg5[%c0_23, %c0_24] : memref<128x128xf32, #tpu.memory_space<vmem>>, vector<128x128xf32>
    %cst_25 = arith.constant dense<0.000000e+00> : vector<8x128xf32>
    %154 = tpu.matmul %152, %153, %cst_25 {dimension_numbers = #tpu.dot_dimension_numbers<[1], [0], [0], [1], [0, 0, 1, 1], [], []>} : vector<8x128xf32>, vector<128x128xf32>, vector<8x128xf32> -> vector<8x128xf32>
    %c0_26 = arith.constant 0 : index
    %c0_27 = arith.constant 0 : index
    %155 = vector.load %arg6[%c0_26, %c0_27] : memref<1x128xf32, #tpu.memory_space<vmem>>, vector<1x128xf32>
    %156 = vector.broadcast %155 : vector<1x128xf32> to vector<8x128xf32>
    %157 = arith.addf %154, %156 : vector<8x128xf32>
    %158 = tpu.iota {dimensions = array<i32: 1>} : vector<8x128xi32>
    %c10_i32 = arith.constant 10 : i32
    %159 = vector.broadcast %c10_i32 : i32 to vector<8x128xi32>
    %160 = arith.cmpi slt, %158, %159 : vector<8x128xi32>
    %cst_28 = arith.constant -1.000000e+30 : f32
    %161 = vector.broadcast %cst_28 : f32 to vector<8x128xf32>
    %162 = arith.select %160, %157, %161 : vector<8x128xi1>, vector<8x128xf32>
    %cst_29 = arith.constant dense<0xFF800000> : vector<8xf32>
    %163 = vector.multi_reduction <maximumf>, %162, %cst_29 [1] : vector<8x128xf32> to vector<8xf32>
    %164 = vector.shape_cast %163 : vector<8xf32> to vector<8x1xf32>
    %165 = vector.broadcast %164 : vector<8x1xf32> to vector<8x128xf32>
    %166 = arith.subf %157, %165 : vector<8x128xf32>
    %167 = math.exp %166 : vector<8x128xf32>
    %cst_30 = arith.constant 0.000000e+00 : f32
    %168 = vector.broadcast %cst_30 : f32 to vector<8x128xf32>
    %169 = arith.select %160, %167, %168 : vector<8x128xi1>, vector<8x128xf32>
    %cst_31 = arith.constant dense<0.000000e+00> : vector<8xf32>
    %170 = vector.multi_reduction <add>, %169, %cst_31 [1] : vector<8x128xf32> to vector<8xf32>
    %171 = vector.shape_cast %170 : vector<8xf32> to vector<8x1xf32>
    %172 = math.log %171 : vector<8x1xf32>
    %173 = vector.broadcast %172 : vector<8x1xf32> to vector<8x128xf32>
    %174 = arith.subf %166, %173 : vector<8x128xf32>
    %c0_32 = arith.constant 0 : index
    %c0_33 = arith.constant 0 : index
    %175 = vector.load %arg7[%c0_32, %c0_33] : memref<8x128xf32, #tpu.memory_space<vmem>>, vector<8x128xf32>
    tpu.vector_store %arg7[%c0_32, %c0_33], %174 {strides = array<i32>} : memref<8x128xf32, #tpu.memory_space<vmem>>, vector<8x128xf32>,
    return
  }
}

</mosaic_0001>

<bundles_post_ra>
// kernel: cnn_forward.1
= control target key start
LH: loop header
LB: loop body
LE: loop exit
PB: predicated region body
PF: predicated region fallthrough
CT: control target
= control target key end

     0   :  { %12 = vsyncpa [#allocation4], 0  ;;  %s3994_s0 = inlined_call_operand.vmem [shape: f32[8,896], index: 0, kind: input, shape index: {}]   ;;  %s3995_s1 = inlined_call_operand.vmem [shape: f32[27], index: 1, kind: input, shape index: {}]   ;;  %s3996_s2 = inlined_call_operand.vmem [shape: f32[3], index: 2, kind: input, shape index: {}]   ;;  %s3997_s3 = inlined_call_operand.hbm [shape: bf16[3,768,128], index: 3, kind: input, shape index: {}]   ;;  %s3998_s4 = inlined_call_operand.vmem [shape: f32[1,128], index: 4, kind: input, shape index: {}]   ;;  %s3999_s5 = inlined_call_operand.vmem [shape: f32[128,128], index: 5, kind: input, shape index: {}]   ;;  %s4000_s6 = inlined_call_operand.vmem [shape: f32[1,128], index: 6, kind: input, shape index: {}]   ;;  %s4001_s7 = inlined_call_operand.vmem [shape: f32[8,128], index: 7, kind: output, shape index: {}]  }
   0x1   :  { %13 = vsyncpa [#allocation6], 0  ;;  %s22_s26 = sshll.u32 %s3995_s1, 4  ;;  %s23_s26 = int_to_ptr.vmem [resolvable:$true] %s22_s26 }
   0x2   :  { %14 = vsyncpa [#allocation3], 0  ;;  %s31_s29 = sshll.u32 %s3996_s2, 4  ;;  %s2942_s30 = smov [#allocation2]   ;;  %s32_s29 = int_to_ptr.vmem [resolvable:$true] %s31_s29 }
   0x3   :  { %25 = dma.vmem_to_smem %s23_s26, 16, %s2942_s30, [#allocation4]  }
   0x4   :  { %s2943_s8 = smov [#allocation5]   ;;  %s39_s11 = sshll.u32 %s3997_s3, 4  ;;  %s40_s11 = int_to_ptr.hbm [resolvable:$true] %s39_s11 }
   0x5   :  { %34 = dma.vmem_to_smem %s32_s29, 16, %s2943_s8, [#allocation6]  }
   0x6   :  { %s2944_s12 = smov [#allocation7]   ;;  %s2945_s1 = smov 64  }
   0x7   :  { %s41_s13 = sshll.u32 %s2944_s12, 4  ;;  %s2946_s14 = smov 4   ;;  %s42_s13 = int_to_ptr.vmem [resolvable:$true] %s41_s13 }
   0x8   :  { %47 = dma.hbm_to_vmem [thread:$0]  %s40_s11, 18432, %s42_s13, [#allocation3], %s2945_s1, %s2945_s1, %s2946_s14  }
   0x9   :  { %2936 = dma.done.wait [#allocation4], 16  }
   0xa   :  { %2937 = vsyncadd [#allocation4], 4294967280 }
   0xb   :  { %2938 = dma.done.wait [#allocation6], 16  }
   0xc   :  { %2939 = vsyncadd [#allocation6], 4294967280 }
   0xd   :  { %2940 = dma.done.wait [#allocation3], 18432  }
   0xe   :  { %2941 = vsyncadd [#allocation3], 4294948864 }
   0xf   :  { %66 = sfence }
  0x10   :  { %v3007_v0 = vld [vmem:[%s3994_s0 + $0x10] sm:$0xff]  ;;  %v3012_v1 = vld [vmem:[%s3994_s0 + $0x8] sm:$0xff]  ;;  %v3017_v2 = vld [vmem:[%s3994_s0] sm:$0xff]  ;;  %s2947_s19 = smov 127   ;;  %s2948_s20 = smov 126   ;;  %v160_v7 = vlaneseq }
  0x11   :  { %150 = vrot.lane.b32.xlu1 %v3007_v0, %s2947_s19  ;;  %210 = vrot.lane.b32.xlu2 %v3012_v1, %s2948_s20  ;;  %v3034_v3 = vld [vmem:[%s3994_s0 + $0x18] sm:$0xff]  ;;  %s2949_s23 = smov 100   ;;  %s2950_s24 = smov 99   ;;  %v3051_v4 = vld [vmem:[%s3994_s0 + $0x20] sm:$0xff] }
  0x12   :  { %146 = vrot.lane.b32.xlu0 %v3017_v2, %s2947_s19  ;;  %s2951_s27 = smov 98   ;;  %s2952_s28 = smov 72   ;;  %v3092_v5 = vld [vmem:[%s3994_s0 + $0x28] sm:$0xff]  ;;  %v3109_v8 = vld [vmem:[%s3994_s0 + $0x30] sm:$0xff]  ;;  %v3111_v9 = vand.u32 127, %v160_v7 }
  0x13   :  { %s2953_s29 = smov 71   ;;  %s2954_s9 = smov 70  }
  0x14   :  { %vm222_vm0 = vcmp.lt.s32.totalorder %v3111_v9, 126  ;;  %s2121_s12 = sld [smem:[#allocation2 + $0x2]]  ;;  %vm162_vm1 = vcmp.lt.s32.totalorder %v3111_v9, 127  ;;  %vm282_vm2 = vcmp.lt.s32.totalorder %v3111_v9, 100  ;;  %vm342_vm3 = vcmp.lt.s32.totalorder %v3111_v9, 99 }
  0x15   :  { %s3125_s13 = sld [smem:[#allocation2 + $0xb]]  ;;  %vm402_vm4 = vcmp.lt.s32.totalorder %v3111_v9, 98  ;;  %vm462_vm5 = vcmp.lt.s32.totalorder %v3111_v9, 72  ;;  %vm522_vm6 = vcmp.lt.s32.totalorder %v3111_v9, 71  ;;  %vm582_vm7 = vcmp.lt.s32.totalorder %v3111_v9, 70 }
  0x16   :  { %s2139_s1 = sld [smem:[#allocation2 + $0x14]]  ;;  %vm2099_vm8 = vcmp.lt.s32.totalorder %v3111_v9, 10 }
  0x17   :  { %s74_s14 = sld [smem:[#allocation2]] }
  0x18   :  { %s3135_s2 = sld [smem:[#allocation2 + $0x1]] }
  0x19   :  { %212 = vrot.lane.b32.xlu2 %v3007_v0, %s2948_s20  ;;  %208 = vrot.lane.b32.xlu1 %v3017_v2, %s2948_s20  ;;  %s2128_s15 = sld [smem:[#allocation2 + $0x9]] }
  0x1a   :  { %148 = vrot.lane.b32.xlu0 %v3012_v1, %s2947_s19  ;;  %s3137_s3 = sld [smem:[#allocation2 + $0xa]]  ;;  %v3161_v21 = vstv %s2121_s12 }
  0x1b   :  { %s2137_s16 = sld [smem:[#allocation2 + $0x12]]  ;;  %v3170_v25 = vstv %s3125_s13 }
  0x1c   :  { %s101_s17 = sld [smem:[#allocation5]]  ;;  %v3172_v26 = vstv %s2139_s1 }
  0x1d   :  { %s2146_s18 = sld [smem:[#allocation5 + $0x1]]  ;;  %v3153_v17 = vstv %s74_s14  ;;  %4037 = vst [vmem:[#allocation12_spill] sm:$0xff] %v3172_v26 }
  0x1e   :  { %v109_v20 = vmul.f32 %v3153_v17, %v3012_v1  ;;  %v108_v24 = vmul.f32 %v3153_v17, %v3017_v2  ;;  %s3190_s21 = sld [smem:[#allocation2 + $0x15]]  ;;  %v3193_v32 = vstv %s3135_s2 }
  0x1f   :  { %v3155_v18 = vstv %s2128_s15  ;;  %s2141_s22 = sld [smem:[#allocation2 + $0x16]] }
  0x20   :  { %v122_v22 = vmul.f32 %v3155_v18, %v3012_v1  ;;  %v121_v27 = vmul.f32 %v3155_v18, %v3017_v2  ;;  %v3196_v33 = vstv %s3137_s3  ;;  %s2122_s25 = sld [smem:[#allocation2 + $0x3]] }
  0x21   :  { %152 = vrot.lane.b32.xlu2 %v3034_v3, %s2947_s19  ;;  %270 = vrot.lane.b32.xlu1 %v3012_v1, %s2949_s23  ;;  %v3157_v19 = vstv %s2137_s16  ;;  %s2131_s26 = sld [smem:[#allocation2 + $0xc]] }
  0x22   :  { %268 = vrot.lane.b32.xlu0 %v3017_v2, %s2949_s23  ;;  %4036 = vst [vmem:[#allocation11_spill] sm:$0xff] %v3157_v19  ;;  %v135_v23 = vmul.f32 %v3157_v19, %v3012_v1  ;;  %v134_v28 = vmul.f32 %v3157_v19, %v3017_v2  ;;  %v3182_v29 = vstv %s101_s17  ;;  %s3453_s30 = sld [smem:[#allocation2 + $0xe]] }
  0x23   :  { %v3184_v30 = vstv %s2146_s18  ;;  %v115_v37 = vadd.f32 %v109_v20, %v3182_v29  ;;  %v114_v42 = vadd.f32 %v108_v24, %v3182_v29  ;;  %s3469_s8 = sld [smem:[#allocation2 + $0xf]] }
  0x24   :  { %v128_v39 = vadd.f32 %v122_v22, %v3184_v30  ;;  %v127_v44 = vadd.f32 %v121_v27, %v3184_v30  ;;  %s3491_s10 = sld [smem:[#allocation2 + $0x11]] }
  0x25   :  { %s3503_s11 = sld [smem:[#allocation2 + $0x1a]] }
  0x26   :  { %s2124_s12 = sld [smem:[#allocation2 + $0x5]] }
  0x27   :  { %s3632_s13 = sld [smem:[#allocation2 + $0x6]] }
  0x28   :  { %s3656_s1 = sld [smem:[#allocation2 + $0x7]] }
  0x29   :  { %330 = vrot.lane.b32.xlu2 %v3012_v1, %s2950_s24  ;;  %328 = vrot.lane.b32.xlu1 %v3017_v2, %s2950_s24  ;;  %s3670_s14 = sld [smem:[#allocation2 + $0x8]] }
  0x2a   :  { %272 = vrot.lane.b32.xlu0 %v3007_v0, %s2949_s23 }
  0x31   :  { %332 = vrot.lane.b32.xlu2 %v3007_v0, %s2950_s24  ;;  %214 = vrot.lane.b32.xlu1 %v3034_v3, %s2948_s20 }
  0x32   :  { %154 = vrot.lane.b32.xlu0 %v3051_v4, %s2947_s19 }
  0x39   :  { %216 = vrot.lane.b32.xlu2 %v3051_v4, %s2948_s20  ;;  %390 = vrot.lane.b32.xlu1 %v3012_v1, %s2951_s27 }
  0x3a   :  { %388 = vrot.lane.b32.xlu0 %v3017_v2, %s2951_s27 }
  0x41   :  { %448 = vrot.lane.b32.xlu2 %v3017_v2, %s2952_s28  ;;  %392 = vrot.lane.b32.xlu1 %v3007_v0, %s2951_s27 }
  0x42   :  { %274 = vrot.lane.b32.xlu0 %v3034_v3, %s2949_s23 }
  0x49   :  { %334 = vrot.lane.b32.xlu2 %v3034_v3, %s2950_s24  ;;  %276 = vrot.lane.b32.xlu1 %v3051_v4, %s2949_s23 }
  0x4a   :  { %450 = vrot.lane.b32.xlu0 %v3012_v1, %s2952_s28 }
  0x51   :  { %510 = vrot.lane.b32.xlu2 %v3012_v1, %s2953_s29  ;;  %508 = vrot.lane.b32.xlu1 %v3017_v2, %s2953_s29 }
  0x52   :  { %452 = vrot.lane.b32.xlu0 %v3007_v0, %s2952_s28 }
  0x59   :  { %512 = vrot.lane.b32.xlu2 %v3007_v0, %s2953_s29  ;;  %394 = vrot.lane.b32.xlu1 %v3034_v3, %s2951_s27 }
  0x5a   :  { %336 = vrot.lane.b32.xlu0 %v3051_v4, %s2950_s24 }
  0x61   :  { %156 = vrot.lane.b32.xlu2 %v3092_v5, %s2947_s19  ;;  %570 = vrot.lane.b32.xlu1 %v3012_v1, %s2954_s9 }
  0x62   :  { %568 = vrot.lane.b32.xlu0 %v3017_v2, %s2954_s9  ;;  %v3234_v2 = vstv %s3190_s21 }
  0x63   :  { %4040 = vst [vmem:[#allocation15_spill] sm:$0xff] %v3234_v2 }
  0x69   :  { %572 = vrot.lane.b32.xlu2 %v3007_v0, %s2954_s9  ;;  %454 = vrot.lane.b32.xlu1 %v3034_v3, %s2952_s28 }
  0x6a   :  { %396 = vrot.lane.b32.xlu0 %v3051_v4, %s2951_s27 }
  0x6b   :  { %v211_v6 = vpop.permute.xlu2 %210 }
  0x71   :  { %456 = vrot.lane.b32.xlu2 %v3051_v4, %s2952_s28  ;;  %218 = vrot.lane.b32.xlu1 %v3092_v5, %s2948_s20 }
  0x72   :  { %158 = vrot.lane.b32.xlu0 %v3109_v8, %s2947_s19  ;;  %s2147_s19 = sld [smem:[#allocation5 + $0x2]] }
  0x73   :  { %v3120_v10 = vpop.permute.xlu2 %212 }
  0x74   :  { %v227_v11 = vsel %vm222_vm0, %v211_v6, %v3120_v10 }
  0x75   :  { %v231_v43 = vmul.f32 %v3161_v21, %v227_v11  ;;  %v244_v46 = vmul.f32 %v3170_v25, %v227_v11  ;;  %v257_v47 = vmul.f32 %v3172_v26, %v227_v11 }
  0x78   :  { %v3186_v31 = vstv %s2147_s19 }
  0x79   :  { %278 = vrot.lane.b32.xlu2 %v3092_v5, %s2949_s23  ;;  %220 = vrot.lane.b32.xlu1 %v3109_v8, %s2948_s20  ;;  %s2138_s20 = sld [smem:[#allocation2 + $0x13]]  ;;  %4038 = vst [vmem:[#allocation13_spill] sm:$0xff] %v3186_v31  ;;  %v141_v40 = vadd.f32 %v135_v23, %v3186_v31  ;;  %v140_v45 = vadd.f32 %v134_v28, %v3186_v31 }
  0x7a   :  { %514 = vrot.lane.b32.xlu0 %v3034_v3, %s2953_s29 }
  0x7b   :  { %v3133_v12 = vpop.permute.xlu2 %152 }
  0x7f   :  { %v3198_v34 = vstv %s2138_s20 }
  0x80   :  { %4039 = vst [vmem:[#allocation14_spill] sm:$0xff] %v3198_v34 }
  0x81   :  { %280 = vrot.lane.b32.xlu2 %v3109_v8, %s2949_s23  ;;  %574 = vrot.lane.b32.xlu1 %v3034_v3, %s2954_s9  ;;  %s3316_s23 = sld [smem:[#allocation2 + $0x17]] }
  0x82   :  { %516 = vrot.lane.b32.xlu0 %v3051_v4, %s2953_s29 }
  0x83   :  { %v151_v13 = vpop.permute.xlu1 %150  ;;  %v3146_v14 = vpop.permute.xlu2 %330 }
  0x84   :  { %v3151_v15 = vsel %vm162_vm1, %v151_v13, %v3133_v12  ;;  %v147_v16 = vpop.permute.xlu0 %146 }
  0x89   :  { %340 = vrot.lane.b32.xlu2 %v3109_v8, %s2950_s24  ;;  %576 = vrot.lane.b32.xlu1 %v3051_v4, %s2954_s9 }
  0x8a   :  { %338 = vrot.lane.b32.xlu0 %v3092_v5, %s2950_s24  ;;  %s3354_s24 = sld [smem:[#allocation2 + $0x4]] }
  0x8b   :  { %v3200_v35 = vpop.permute.xlu2 %332  ;;  %v209_v36 = vpop.permute.xlu1 %208 }
  0x8c   :  { %v228_v38 = vsel %vm222_vm0, %v209_v36, %v211_v6  ;;  %v149_v41 = vpop.permute.xlu0 %148 }
  0x8d   :  { %v167_v48 = vsel %vm162_vm1, %v149_v41, %v151_v13  ;;  %v168_v49 = vsel %vm162_vm1, %v147_v16, %v149_v41  ;;  %v230_v54 = vmul.f32 %v3161_v21, %v228_v38  ;;  %v243_v55 = vmul.f32 %v3170_v25, %v228_v38 }
  0x8e   :  { %v170_v50 = vmul.f32 %v3193_v32, %v168_v49  ;;  %v171_v51 = vmul.f32 %v3193_v32, %v167_v48  ;;  %v183_v52 = vmul.f32 %v3196_v33, %v168_v49  ;;  %v184_v53 = vmul.f32 %v3196_v33, %v167_v48 }
  0x8f   :  { %v196_v56 = vmul.f32 %v3198_v34, %v168_v49  ;;  %v197_v57 = vmul.f32 %v3198_v34, %v167_v48  ;;  %v256_v62 = vmul.f32 %v3172_v26, %v228_v38  ;;  %v110_v38 = vmul.f32 %v3153_v17, %v3007_v0 }
  0x90   :  { %v176_v58 = vadd.f32 %v170_v50, %v114_v42  ;;  %v177_v59 = vadd.f32 %v171_v51, %v115_v37  ;;  %v189_v60 = vadd.f32 %v183_v52, %v127_v44  ;;  %v190_v61 = vadd.f32 %v184_v53, %v128_v39 }
  0x91   :  { %458 = vrot.lane.b32.xlu2 %v3092_v5, %s2952_s28  ;;  %v202_v63 = vadd.f32 %v196_v56, %v140_v45  ;;  %v203_v1 = vadd.f32 %v197_v57, %v141_v40  ;;  %400 = vrot.lane.b32.xlu1 %v3109_v8, %s2951_s27  ;;  %v3255_v37 = vstv %s2141_s22  ;;  %v3267_v39 = vsel %vm342_vm3, %v3146_v14, %v3200_v35 }
  0x92   :  { %398 = vrot.lane.b32.xlu0 %v3092_v5, %s2951_s27  ;;  %v3238_v11 = vadd.f32 %v230_v54, %v176_v58  ;;  %v3240_v13 = vadd.f32 %v243_v55, %v189_v60  ;;  %v3242_v16 = vadd.f32 %v231_v43, %v177_v59  ;;  %v3244_v20 = vadd.f32 %v244_v46, %v190_v61  ;;  %v2779_v54 = vld [vmem:[#allocation7 + $0x1b8] sm:$0xff]  ;;  %s2132_s27 = sld [smem:[#allocation2 + $0xd]] }
  0x93   :  { %v3236_v6 = vpop.permute.xlu2 %216  ;;  %v271_v7 = vpop.permute.xlu1 %270  ;;  %v262_v23 = vadd.f32 %v256_v62, %v202_v63  ;;  %v263_v24 = vadd.f32 %v257_v47, %v203_v1  ;;  %4043 = vst [vmem:[#allocation18_spill] sm:$0xff] %v3255_v37  ;;  %v123_v42 = vmul.f32 %v3155_v18, %v3007_v0  ;;  %v136_v45 = vmul.f32 %v3157_v19, %v3007_v0  ;;  %v2787_v55 = vld [vmem:[#allocation7 + $0x1f8] sm:$0xff]  ;;  %v2786_v63 = vld [vmem:[#allocation7 + $0x1f0] sm:$0xff] }
  0x94   :  { %4041 = vst [vmem:[#allocation16_spill] sm:$0xff] %v3238_v11  ;;  %v269_v22 = vpop.permute.xlu0 %268  ;;  %v377_v48 = vmul.f32 %v3255_v37, %v3267_v39  ;;  %v116_v49 = vadd.f32 %v110_v38, %v3182_v29  ;;  %v172_v51 = vmul.f32 %v3193_v32, %v3151_v15  ;;  %v185_v52 = vmul.f32 %v3196_v33, %v3151_v15  ;;  %v2795_v1 = vld [vmem:[#allocation7 + $0x238] sm:$0xff] }
  0x95   :  { %4042 = vst [vmem:[#allocation17_spill] sm:$0xff] %v3242_v16  ;;  %v3248_v27 = vsel %vm282_vm2, %v269_v22, %v271_v7  ;;  %v129_v0 = vadd.f32 %v123_v42, %v3184_v30  ;;  %v142_v56 = vadd.f32 %v136_v45, %v3186_v31  ;;  %v198_v57 = vmul.f32 %v3198_v34, %v3151_v15  ;;  %v2778_v15 = vld [vmem:[#allocation7 + $0x1b0] sm:$0xff]  ;;  %v2800_v16 = vld [vmem:[#allocation7 + $0x260] sm:$0xff] }
  0x96   :  { %v316_v28 = vmul.f32 %v3234_v2, %v3248_v27  ;;  %4044 = vst [vmem:[#allocation19_spill] sm:$0xff] %v3267_v39  ;;  %v111_v58 = vmul.f32 %v3153_v17, %v3034_v3  ;;  %v124_v59 = vmul.f32 %v3155_v18, %v3034_v3  ;;  %v137_v60 = vmul.f32 %v3157_v19, %v3034_v3 }
  0x97   :  { %1133 = vmatpush.bf16.msra.mxu0 %v2779_v54  ;;  %1146 = vmatpush.bf16.msra.mxu1 %v2787_v55  ;;  %v191_v22 = vadd.f32 %v185_v52, %v129_v0  ;;  %v2785_v54 = vld [vmem:[#allocation7 + $0x1e8] sm:$0xff]  ;;  %v2794_v55 = vld [vmem:[#allocation7 + $0x230] sm:$0xff] }
  0x98   :  { %v322_v36 = vadd.f32 %v316_v28, %v262_v23  ;;  %v130_v38 = vadd.f32 %v124_v59, %v3184_v30  ;;  %1159 = vmatpush.bf16.msra.mxu2 %v2795_v1  ;;  %v2793_v59 = vld [vmem:[#allocation7 + $0x228] sm:$0xff]  ;;  %v2776_v1 = vld [vmem:[#allocation7 + $0x1a0] sm:$0xff] }
  0x99   :  { %520 = vrot.lane.b32.xlu2 %v3109_v8, %s2953_s29  ;;  %518 = vrot.lane.b32.xlu1 %v3092_v5, %s2953_s29  ;;  %s2144_s29 = sld [smem:[#allocation2 + $0x19]] }
  0x9a   :  { %460 = vrot.lane.b32.xlu0 %v3109_v8, %s2952_s28  ;;  %s3396_s28 = sld [smem:[#allocation2 + $0x18]] }
  0x9b   :  { %v3269_v40 = vpop.permute.xlu2 %448  ;;  %v329_v41 = vpop.permute.xlu1 %328  ;;  %1134 = vmatpush.bf16.msra.mxu0 %v2778_v15  ;;  %1147 = vmatpush.bf16.msra.mxu1 %v2786_v63  ;;  %v3352_v63 = vstv %s3316_s23 }
  0x9c   :  { %v3276_v43 = vsel %vm342_vm3, %v329_v41, %v3146_v14  ;;  %v3278_v44 = vpop.permute.xlu0 %272  ;;  %1160 = vmatpush.bf16.msra.mxu2 %v2794_v55  ;;  %4046 = vst [vmem:[#allocation21_spill] sm:$0xff] %v3352_v63  ;;  %v2801_v55 = vld [vmem:[#allocation7 + $0x268] sm:$0xff] }
  0x9d   :  { %v376_v46 = vmul.f32 %v3255_v37, %v3276_v43  ;;  %v3287_v47 = vsel %vm282_vm2, %v271_v7, %v3278_v44  ;;  %v178_v7 = vadd.f32 %v172_v51, %v116_v49 }
  0x9e   :  { %4045 = vst [vmem:[#allocation20_spill] sm:$0xff] %v3287_v47  ;;  %v317_v14 = vmul.f32 %v3234_v2, %v3287_v47 }
  0x9f   :  { %v3294_v50 = vadd.f32 %v376_v46, %v322_v36  ;;  %v117_v36 = vadd.f32 %v111_v58, %v3182_v29  ;;  %v143_v46 = vadd.f32 %v137_v60, %v3186_v31  ;;  %v2803_v60 = vld [vmem:[#allocation7 + $0x278] sm:$0xff]  ;;  %1148 = vmatpush.bf16.msra.mxu1 %v2785_v54 }
  0xa0   :  { %v323_v53 = vadd.f32 %v317_v14, %v263_v24  ;;  %v204_v24 = vadd.f32 %v198_v57, %v142_v56  ;;  %1172 = vmatpush.bf16.msra.mxu3 %v2803_v60  ;;  %1161 = vmatpush.bf16.msra.mxu2 %v2793_v59 }
  0xa1   :  { %580 = vrot.lane.b32.xlu1 %v3109_v8, %s2954_s9 }
  0xa2   :  { %578 = vrot.lane.b32.xlu0 %v3092_v5, %s2954_s9  ;;  %v3314_v61 = vadd.f32 %v377_v48, %v323_v53  ;;  %v2777_v53 = vld [vmem:[#allocation7 + $0x1a8] sm:$0xff]  ;;  %s3484_s9 = sld [smem:[#allocation2 + $0x10]] }
  0xa3   :  { %v215_v62 = vpop.permute.xlu1 %214  ;;  %v3318_v23 = vpop.permute.xlu2 %334  ;;  %1135 = vmatpush.bf16.msra.mxu0 %v2777_v53 }
  0xa4   :  { %v225_v5 = vsel %vm222_vm0, %v215_v62, %v3236_v6  ;;  %v226_v3 = vsel %vm222_vm0, %v3120_v10, %v215_v62  ;;  %v3326_v8 = vpop.permute.xlu0 %154 }
  0xa5   :  { %v232_v28 = vmul.f32 %v3161_v21, %v226_v3  ;;  %v233_v41 = vmul.f32 %v3161_v21, %v225_v5  ;;  %v245_v42 = vmul.f32 %v3170_v25, %v226_v3  ;;  %v258_v45 = vmul.f32 %v3172_v26, %v226_v3 }
  0xa6   :  { %v246_v10 = vmul.f32 %v3170_v25, %v225_v5  ;;  %v165_v14 = vsel %vm162_vm1, %v3133_v12, %v3326_v8  ;;  %v259_v56 = vmul.f32 %v3172_v26, %v225_v5 }
  0xa7   :  { %v3335_v48 = vadd.f32 %v232_v28, %v178_v7  ;;  %v3342_v49 = vadd.f32 %v245_v42, %v191_v22  ;;  %v3344_v0 = vadd.f32 %v258_v45, %v204_v24  ;;  %v173_v51 = vmul.f32 %v3193_v32, %v165_v14  ;;  %v2784_v7 = vld [vmem:[#allocation7 + $0x1e0] sm:$0xff]  ;;  %1136 = vmatpush.bf16.msra.mxu0 %v2776_v1  ;;  %v2775_v42 = vld [vmem:[#allocation7 + $0x198] sm:$0xff] }
  0xa8   :  { %v186_v52 = vmul.f32 %v3196_v33, %v165_v14  ;;  %v199_v57 = vmul.f32 %v3198_v34, %v165_v14  ;;  %1149 = vmatpush.bf16.msra.mxu1 %v2784_v7  ;;  %v2783_v45 = vld [vmem:[#allocation7 + $0x1d8] sm:$0xff] }
  0xa9   :  { %v179_v58 = vadd.f32 %v173_v51, %v117_v36  ;;  %v2791_v14 = vld [vmem:[#allocation7 + $0x218] sm:$0xff] }
  0xaa   :  { %v192_v12 = vadd.f32 %v186_v52, %v130_v38  ;;  %v205_v62 = vadd.f32 %v199_v57, %v143_v46  ;;  %v2792_v46 = vld [vmem:[#allocation7 + $0x220] sm:$0xff]  ;;  %v2774_v52 = vld [vmem:[#allocation7 + $0x190] sm:$0xff]  ;;  %v346_v57 = vsel %vm342_vm3, %v3200_v35, %v3318_v23 }
  0xab   :  { %v391_v15 = vpop.permute.xlu1 %390  ;;  %v3356_v5 = vadd.f32 %v233_v41, %v179_v58  ;;  %v3366_v36 = vpop.permute.xlu2 %510  ;;  %1162 = vmatpush.bf16.msra.mxu2 %v2792_v46  ;;  %1137 = vmatpush.bf16.msra.mxu0 %v2775_v42  ;;  %v3387_v58 = vstv %s2122_s25  ;;  %v2773_v42 = vld [vmem:[#allocation7 + $0x188] sm:$0xff]  ;;  %v378_v46 = vmul.f32 %v3255_v37, %v346_v57 }
  0xac   :  { %v389_v22 = vpop.permute.xlu0 %388  ;;  %v3358_v3 = vadd.f32 %v246_v10, %v192_v12  ;;  %v3364_v28 = vadd.f32 %v259_v56, %v205_v62  ;;  %v2802_v10 = vld [vmem:[#allocation7 + $0x270] sm:$0xff]  ;;  %1150 = vmatpush.bf16.msra.mxu1 %v2783_v45  ;;  %v3381_v56 = vstv %s3354_s24  ;;  %v3389_v12 = vstv %s2131_s26  ;;  %v2781_v45 = vld [vmem:[#allocation7 + $0x1c8] sm:$0xff] }
  0xad   :  { %v3362_v24 = vsel %vm402_vm4, %v389_v22, %v391_v15  ;;  %1173 = vmatpush.bf16.msra.mxu3 %v2802_v10  ;;  %v3398_v62 = vstv %s2132_s27  ;;  %v352_v7 = vmul.f32 %v3381_v56, %v346_v57 }
  0xae   :  { %v436_v38 = vmul.f32 %v3352_v63, %v3362_v24  ;;  %v365_v22 = vmul.f32 %v3398_v62, %v346_v57  ;;  %v2780_v57 = vld [vmem:[#allocation7 + $0x1c0] sm:$0xff] }
  0xaf   :  { %1163 = vmatpush.bf16.msra.mxu2 %v2791_v14  ;;  %1138 = vmatpush.bf16.msra.mxu0 %v2774_v52 }
  0xb0   :  { %v3371_v41 = vadd.f32 %v436_v38, %v3294_v50  ;;  %v2782_v50 = vld [vmem:[#allocation7 + $0x1d0] sm:$0xff] }
  0xb1   :  { %1151 = vmatpush.bf16.msra.mxu1 %v2782_v50  ;;  %1174 = vmatpush.bf16.msra.mxu3 %v2801_v55 }
  0xb3   :  { %v3373_v51 = vpop.permute.xlu1 %392  ;;  %v3405_v38 = vpop.permute.xlu2 %512  ;;  %1139 = vmatpush.bf16.msra.mxu0 %v2773_v42 }
  0xb4   :  { %v3378_v53 = vsel %vm402_vm4, %v391_v15, %v3373_v51  ;;  %v275_v54 = vpop.permute.xlu0 %274 }
  0xb5   :  { %4047 = vst [vmem:[#allocation22_spill] sm:$0xff] %v3378_v53  ;;  %v437_v59 = vmul.f32 %v3352_v63, %v3378_v53  ;;  %v286_v60 = vsel %vm282_vm2, %v3278_v44, %v275_v54  ;;  %1152 = vmatpush.bf16.msra.mxu1 %v2781_v45  ;;  %1175 = vmatpush.bf16.msra.mxu3 %v2800_v16 }
  0xb6   :  { %v292_v15 = vmul.f32 %v3387_v58, %v286_v60  ;;  %v305_v35 = vmul.f32 %v3389_v12, %v286_v60  ;;  %v318_v1 = vmul.f32 %v3234_v2, %v286_v60  ;;  %v2790_v60 = vld [vmem:[#allocation7 + $0x210] sm:$0xff] }
  0xb7   :  { %v3408_v44 = vadd.f32 %v437_v59, %v3314_v61  ;;  %1164 = vmatpush.bf16.msra.mxu2 %v2790_v60  ;;  %v2731_v60 = vld [vmem:[#allocation7 + $0x38] sm:$0xff] }
  0xb8   :  { %v298_v10 = vadd.f32 %v292_v15, %v3335_v48  ;;  %v311_v14 = vadd.f32 %v305_v35, %v3342_v49  ;;  %v324_v52 = vadd.f32 %v318_v1, %v3344_v0  ;;  %v2772_v0 = vld [vmem:[#allocation7 + $0x180] sm:$0xff]  ;;  %v2789_v15 = vld [vmem:[#allocation7 + $0x208] sm:$0xff]  ;;  %v2799_v35 = vld [vmem:[#allocation7 + $0x258] sm:$0xff] }
  0xb9   :  { %1140 = vmatpush.bf16.msra.mxu0 %v2772_v0  ;;  %1153 = vmatpush.bf16.msra.mxu1 %v2780_v57  ;;  %v2811_v57 = vld [vmem:[#allocation7 + $0x2b8] sm:$0xff] }
  0xba   :  { %v3417_v61 = vadd.f32 %v352_v7, %v298_v10  ;;  %v3419_v50 = vadd.f32 %v365_v22, %v311_v14  ;;  %v3421_v55 = vadd.f32 %v378_v46, %v324_v52  ;;  %v3430_v22 = vstv %s3396_s28  ;;  %1176 = vmatpush.bf16.msra.mxu3 %v2799_v35  ;;  %v2788_v14 = vld [vmem:[#allocation7 + $0x200] sm:$0xff]  ;;  %v2798_v52 = vld [vmem:[#allocation7 + $0x250] sm:$0xff] }
  0xbb   :  { %v3414_v11 = vpop.permute.xlu1 %276  ;;  %4049 = vst [vmem:[#allocation24_spill] sm:$0xff] %v3430_v22  ;;  %1165 = vmatpush.bf16.msra.mxu2 %v2789_v15  ;;  %v3451_v10 = vpop.permute.xlu2 %156 }
  0xbc   :  { %4048 = vst [vmem:[#allocation23_spill] sm:$0xff] %v3417_v61  ;;  %v285_v48 = vsel %vm282_vm2, %v275_v54, %v3414_v11  ;;  %v451_v49 = vpop.permute.xlu0 %450  ;;  %v2796_v61 = vld [vmem:[#allocation7 + $0x240] sm:$0xff] }
  0xbd   :  { %v293_v59 = vmul.f32 %v3387_v58, %v285_v48  ;;  %v306_v1 = vmul.f32 %v3389_v12, %v285_v48  ;;  %v319_v7 = vmul.f32 %v3234_v2, %v285_v48  ;;  %v3435_v42 = vsel %vm462_vm5, %v3269_v40, %v451_v49  ;;  %1185 = vmatpush.bf16.msrb.mxu0 %v2811_v57 }
  0xbe   :  { %4050 = vst [vmem:[#allocation25_spill] sm:$0xff] %v3435_v42  ;;  %v496_v46 = vmul.f32 %v3430_v22, %v3435_v42  ;;  %v3449_v40 = vstv %s2144_s29  ;;  %1177 = vmatpush.bf16.msra.mxu3 %v2798_v52  ;;  %v303_v52 = vmul.f32 %v3389_v12, %v3248_v27  ;;  %v364_v57 = vmul.f32 %v3398_v62, %v3267_v39 }
  0xbf   :  { %v3438_v54 = vadd.f32 %v293_v59, %v3356_v5  ;;  %v3441_v16 = vadd.f32 %v306_v1, %v3358_v3  ;;  %v3444_v45 = vadd.f32 %v319_v7, %v3364_v28  ;;  %4054 = vst [vmem:[#allocation29_spill] sm:$0xff] %v3449_v40  ;;  %v3459_v5 = vsel %vm522_vm6, %v3366_v36, %v3405_v38  ;;  %v2819_v59 = vld [vmem:[#allocation7 + $0x2f8] sm:$0xff]  ;;  %v2797_v1 = vld [vmem:[#allocation7 + $0x248] sm:$0xff] }
  0xc0   :  { %4055 = vst [vmem:[#allocation30_spill] sm:$0xff] %v3459_v5  ;;  %v502_v3 = vadd.f32 %v496_v46, %v3371_v41  ;;  %1166 = vmatpush.bf16.msra.mxu2 %v2788_v14  ;;  %v557_v35 = vmul.f32 %v3449_v40, %v3459_v5  ;;  %v304_v7 = vmul.f32 %v3389_v12, %v3287_v47  ;;  %v2810_v14 = vld [vmem:[#allocation7 + $0x2b0] sm:$0xff] }
  0xc1   :  { %4051 = vst [vmem:[#allocation26_spill] sm:$0xff] %v3438_v54  ;;  %1198 = vmatpush.bf16.msrb.mxu1 %v2819_v59  ;;  %v3499_v59 = vstv %s3453_s30  ;;  %1186 = vmatpush.bf16.msrb.mxu0 %v2810_v14  ;;  %v309_v37 = vadd.f32 %v303_v52, %v3240_v13  ;;  %v2738_v52 = vld [vmem:[#allocation7 + $0x70] sm:$0xff] }
  0xc2   :  { %4052 = vst [vmem:[#allocation27_spill] sm:$0xff] %v3441_v16  ;;  %1178 = vmatpush.bf16.msra.mxu3 %v2797_v1  ;;  %v363_v1 = vmul.f32 %v3398_v62, %v3276_v43  ;;  %v424_v14 = vmul.f32 %v3499_v59, %v3378_v53  ;;  %v423_v16 = vmul.f32 %v3499_v59, %v3362_v24 }
  0xc3   :  { %4053 = vst [vmem:[#allocation28_spill] sm:$0xff] %v3444_v45  ;;  %v509_v28 = vpop.permute.xlu1 %508  ;;  %v2818_v45 = vld [vmem:[#allocation7 + $0x2f0] sm:$0xff] }
  0xc4   :  { %v3465_v48 = vsel %vm522_vm6, %v509_v28, %v3366_v36  ;;  %v3467_v0 = vpop.permute.xlu0 %452  ;;  %1499 = vmatpush.bf16.msrb.mxu2 %v2731_v60  ;;  %v2730_v28 = vld [vmem:[#allocation7 + $0x30] sm:$0xff] }
  0xc5   :  { %4056 = vst [vmem:[#allocation31_spill] sm:$0xff] %v3465_v48  ;;  %v556_v15 = vmul.f32 %v3449_v40, %v3465_v48  ;;  %v3476_v41 = vsel %vm462_vm5, %v451_v49, %v3467_v0  ;;  %1199 = vmatpush.bf16.msrb.mxu1 %v2818_v45  ;;  %v3520_v45 = vstv %s3469_s8 }
  0xc6   :  { %4057 = vst [vmem:[#allocation32_spill] sm:$0xff] %v3476_v41  ;;  %v497_v36 = vmul.f32 %v3430_v22, %v3476_v41  ;;  %1179 = vmatpush.bf16.msra.mxu3 %v2796_v61  ;;  %v484_v47 = vmul.f32 %v3520_v45, %v3476_v41  ;;  %v483_v13 = vmul.f32 %v3520_v45, %v3435_v42  ;;  %v2728_v61 = vld [vmem:[#allocation7 + $0x20] sm:$0xff] }
  0xc7   :  { %v3486_v46 = vadd.f32 %v556_v15, %v502_v3  ;;  %v2729_v3 = vld [vmem:[#allocation7 + $0x28] sm:$0xff] }
  0xc8   :  { %v503_v49 = vadd.f32 %v497_v36, %v3408_v44  ;;  %1500 = vmatpush.bf16.msrb.mxu2 %v2730_v28  ;;  %v310_v44 = vadd.f32 %v304_v7, %v3244_v20  ;;  %v2809_v36 = vld [vmem:[#allocation7 + $0x2a8] sm:$0xff] }
  0xc9   :  { %v2817_v28 = vld [vmem:[#allocation7 + $0x2e8] sm:$0xff]  ;;  %1187 = vmatpush.bf16.msrb.mxu0 %v2809_v36  ;;  %v3543_v36 = vstv %s3491_s10 }
  0xca   :  { %v3493_v60 = vadd.f32 %v557_v35, %v503_v49  ;;  %v2739_v35 = vld [vmem:[#allocation7 + $0x78] sm:$0xff]  ;;  %v3507_v49 = vpop.permute.xlu2 %572  ;;  %v370_v39 = vadd.f32 %v364_v57, %v310_v44  ;;  %1200 = vmatpush.bf16.msrb.mxu1 %v2817_v28  ;;  %v2808_v57 = vld [vmem:[#allocation7 + $0x2a0] sm:$0xff] }
  0xcb   :  { %v3501_v15 = vpop.permute.xlu1 %394  ;;  %1512 = vmatpush.bf16.msrb.mxu3 %v2739_v35  ;;  %v2816_v44 = vld [vmem:[#allocation7 + $0x2e0] sm:$0xff] }
  0xcc   :  { %v3513_v20 = vsel %vm402_vm4, %v3373_v51, %v3501_v15  ;;  %v3515_v7 = vpop.permute.xlu0 %336  ;;  %1501 = vmatpush.bf16.msrb.mxu2 %v2729_v3  ;;  %v3528_v51 = vstv %s3484_s9  ;;  %v430_v3 = vadd.f32 %v424_v14, %v370_v39  ;;  %v2737_v39 = vld [vmem:[#allocation7 + $0x68] sm:$0xff]  ;;  %v2807_v14 = vld [vmem:[#allocation7 + $0x298] sm:$0xff] }
  0xcd   :  { %v438_v54 = vmul.f32 %v3352_v63, %v3513_v20  ;;  %v369_v63 = vadd.f32 %v363_v1, %v309_v37  ;;  %v544_v37 = vmul.f32 %v3528_v51, %v3459_v5  ;;  %v3546_v1 = vstv %s3503_s11  ;;  %1188 = vmatpush.bf16.msrb.mxu0 %v2808_v57 }
  0xce   :  { %v490_v35 = vadd.f32 %v484_v47, %v430_v3  ;;  %4058 = vst [vmem:[#allocation33_spill] sm:$0xff] %v3546_v1  ;;  %1201 = vmatpush.bf16.msrb.mxu1 %v2816_v44 }
  0xcf   :  { %v3533_v53 = vadd.f32 %v438_v54, %v3421_v55  ;;  %v429_v41 = vadd.f32 %v423_v16, %v369_v63  ;;  %v543_v55 = vmul.f32 %v3528_v51, %v3465_v48  ;;  %v2727_v54 = vld [vmem:[#allocation7 + $0x18] sm:$0xff]  ;;  %1513 = vmatpush.bf16.msrb.mxu3 %v2738_v52 }
  0xd0   :  { %1502 = vmatpush.bf16.msrb.mxu2 %v2728_v61  ;;  %v2815_v61 = vld [vmem:[#allocation7 + $0x2d8] sm:$0xff]  ;;  %v550_v44 = vadd.f32 %v544_v37, %v490_v35  ;;  %v2814_v37 = vld [vmem:[#allocation7 + $0x2d0] sm:$0xff]  ;;  %v2725_v35 = vld [vmem:[#allocation7 + $0x8] sm:$0xff] }
  0xd1   :  { %v489_v42 = vadd.f32 %v483_v13, %v429_v41  ;;  %1189 = vmatpush.bf16.msrb.mxu0 %v2807_v14 }
  0xd2   :  { %v3553_v5 = vpop.permute.xlu2 %456  ;;  %1202 = vmatpush.bf16.msrb.mxu1 %v2815_v61  ;;  %v164_v61 = vsel %vm162_vm1, %v3326_v8, %v3451_v10  ;;  %v2724_v8 = vld [vmem:[#allocation7] sm:$0xff] }
  0xd3   :  { %v571_v28 = vpop.permute.xlu1 %570  ;;  %4060 = vst [vmem:[#allocation35_spill] sm:$0xff] %v3553_v5  ;;  %v549_v41 = vadd.f32 %v543_v55, %v489_v42  ;;  %1514 = vmatpush.bf16.msrb.mxu3 %v2737_v39  ;;  %v2736_v5 = vld [vmem:[#allocation7 + $0x60] sm:$0xff]  ;;  %v125_v39 = vmul.f32 %v3155_v18, %v3051_v4 }
  0xd4   :  { %v3551_v63 = vsel %vm582_vm7, %v571_v28, %v3507_v49  ;;  %v569_v16 = vpop.permute.xlu0 %568  ;;  %1503 = vmatpush.bf16.msrb.mxu2 %v2727_v54 }
  0xd5   :  { %4059 = vst [vmem:[#allocation34_spill] sm:$0xff] %v3551_v63  ;;  %v604_v47 = vmul.f32 %v3543_v36, %v3551_v63  ;;  %v617_v52 = vmul.f32 %v3546_v1, %v3551_v63  ;;  %v3561_v3 = vsel %vm582_vm7, %v569_v16, %v571_v28  ;;  %v2726_v63 = vld [vmem:[#allocation7 + $0x10] sm:$0xff] }
  0xd6   :  { %4061 = vst [vmem:[#allocation36_spill] sm:$0xff] %v3561_v3  ;;  %v603_v13 = vmul.f32 %v3543_v36, %v3561_v3  ;;  %v616_v57 = vmul.f32 %v3546_v1, %v3561_v3  ;;  %v2806_v3 = vld [vmem:[#allocation7 + $0x290] sm:$0xff]  ;;  %1203 = vmatpush.bf16.msrb.mxu1 %v2814_v37  ;;  %v200_v37 = vmul.f32 %v3198_v34, %v164_v61 }
  0xd7   :  { %v3568_v48 = vadd.f32 %v617_v52, %v3493_v60  ;;  %v610_v55 = vadd.f32 %v604_v47, %v550_v44  ;;  %1515 = vmatpush.bf16.msrb.mxu3 %v2736_v5  ;;  %v112_v60 = vmul.f32 %v3153_v17, %v3051_v4  ;;  %v138_v5 = vmul.f32 %v3157_v19, %v3051_v4  ;;  %v2805_v52 = vld [vmem:[#allocation7 + $0x288] sm:$0xff]  ;;  %v2812_v19 = vld [vmem:[#allocation7 + $0x2c0] sm:$0xff] }
  0xd8   :  { %v3571_v28 = vadd.f32 %v616_v57, %v3486_v46  ;;  %v609_v42 = vadd.f32 %v603_v13, %v549_v41  ;;  %1504 = vmatpush.bf16.msrb.mxu2 %v2726_v63  ;;  %v2735_v63 = vld [vmem:[#allocation7 + $0x58] sm:$0xff]  ;;  %1190 = vmatpush.bf16.msrb.mxu0 %v2806_v3  ;;  %v2813_v41 = vld [vmem:[#allocation7 + $0x2c8] sm:$0xff]  ;;  %v131_v44 = vadd.f32 %v125_v39, %v3184_v30  ;;  %v2734_v3 = vld [vmem:[#allocation7 + $0x50] sm:$0xff] }
  0xd9   :  { %4062 = vst [vmem:[#allocation37_spill] sm:$0xff] %v3568_v48  ;;  %v737_v47 = vmax.f32 %v610_v55, 0.0  ;;  %v118_v57 = vadd.f32 %v112_v60, %v3182_v29  ;;  %v174_v4 = vmul.f32 %v3193_v32, %v164_v61  ;;  %v144_v55 = vadd.f32 %v138_v5, %v3186_v31 }
  0xda   :  { %4063 = vst [vmem:[#allocation38_spill] sm:$0xff] %v3571_v28  ;;  %v736_v16 = vmax.f32 %v609_v42, 0.0  ;;  %v187_v42 = vmul.f32 %v3196_v33, %v164_v61  ;;  %v3599_v48 = vpop.permute.xlu2 %278  ;;  %1204 = vmatpush.bf16.msrb.mxu1 %v2813_v41  ;;  %v2755_v41 = vld [vmem:[#allocation7 + $0xf8] sm:$0xff] }
  0xdb   :  { %v3573_v54 = vpop.permute.xlu1 %454  ;;  %1516 = vmatpush.bf16.msrb.mxu3 %v2735_v63  ;;  %v284_v60 = vsel %vm282_vm2, %v3414_v11, %v3599_v48  ;;  %v2804_v63 = vld [vmem:[#allocation7 + $0x280] sm:$0xff]  ;;  %v180_v5 = vadd.f32 %v174_v4, %v118_v57  ;;  %v206_v11 = vadd.f32 %v200_v37, %v144_v55  ;;  %v2746_v37 = vld [vmem:[#allocation7 + $0xb0] sm:$0xff] }
  0xdc   :  { %v3583_v46 = vsel %vm462_vm5, %v3467_v0, %v3573_v54  ;;  %v3585_v14 = vpop.permute.xlu0 %396  ;;  %v742_v13 = vpack.c.bf16 %v736_v16, %v736_v16  ;;  %1505 = vmatpush.bf16.msrb.mxu2 %v2725_v35  ;;  %v743_v35 = vpack.c.bf16 %v737_v47, %v737_v47  ;;  %1191 = vmatpush.bf16.msrb.mxu0 %v2805_v52  ;;  %v2733_v47 = vld [vmem:[#allocation7 + $0x48] sm:$0xff]  ;;  %v2747_v52 = vld [vmem:[#allocation7 + $0xb8] sm:$0xff]  ;;  %v2732_v55 = vld [vmem:[#allocation7 + $0x40] sm:$0xff] }
  0xdd   :  { %4064 = vst [vmem:[#allocation39_spill] sm:$0xff] %v3583_v46  ;;  %v498_v0 = vmul.f32 %v3430_v22, %v3583_v46  ;;  %v193_v31 = vadd.f32 %v187_v42, %v131_v44  ;;  %v294_v57 = vmul.f32 %v3387_v58, %v284_v60  ;;  %v307_v44 = vmul.f32 %v3389_v12, %v284_v60  ;;  %v4074_v22 = vld [vmem:[#allocation17_spill] sm:$0xff] }
  0xde   :  { %1141 = vmatmul.bf16.vlgmr.msra.gmra.mxu0 %v742_v13  ;;  %1154 = vmatmul.bf16.vlgmr.msra.gmra.mxu1 %v743_v35  ;;  %v320_v4 = vmul.f32 %v3234_v2, %v284_v60  ;;  %v2754_v35 = vld [vmem:[#allocation7 + $0xf0] sm:$0xff]  ;;  %v2745_v60 = vld [vmem:[#allocation7 + $0xa8] sm:$0xff]  ;;  %v4073_v2 = vld [vmem:[#allocation27_spill] sm:$0xff] }
  0xdf   :  { %v504_v16 = vadd.f32 %v498_v0, %v3533_v53  ;;  %1517 = vmatpush.bf16.msrb.mxu3 %v2734_v3  ;;  %1205 = vmatpush.bf16.msrb.mxu1 %v2812_v19  ;;  %v2753_v19 = vld [vmem:[#allocation7 + $0xe8] sm:$0xff] }
  0xe0   :  { %1506 = vmatpush.bf16.msrb.mxu2 %v2724_v8  ;;  %1192 = vmatpush.bf16.msrb.mxu0 %v2804_v63  ;;  %v425_v63 = vmul.f32 %v3499_v59, %v3513_v20 }
  0xe3   :  { %v3608_v39 = vpop.permute.xlu1 %218  ;;  %1518 = vmatpush.bf16.msrb.mxu3 %v2733_v47  ;;  %1538 = vmatpush.bf16.msra.mxu1 %v2755_v41  ;;  %v3639_v47 = vpop.permute.xlu2 %280 }
  0xe4   :  { %v224_v53 = vsel %vm222_vm0, %v3236_v6, %v3608_v39  ;;  %v3614_v61 = vpop.permute.xlu0 %158  ;;  %1525 = vmatpush.bf16.msra.mxu0 %v2747_v52  ;;  %v485_v52 = vmul.f32 %v3520_v45, %v3583_v46 }
  0xe5   :  { %v234_v0 = vmul.f32 %v3161_v21, %v224_v53  ;;  %v247_v13 = vmul.f32 %v3170_v25, %v224_v53  ;;  %v260_v8 = vmul.f32 %v3172_v26, %v224_v53 }
  0xe7   :  { %v240_v6 = vadd.f32 %v234_v0, %v180_v5  ;;  %v253_v42 = vadd.f32 %v247_v13, %v193_v31  ;;  %v266_v3 = vadd.f32 %v260_v8, %v206_v11  ;;  %1519 = vmatpush.bf16.msrb.mxu3 %v2732_v55  ;;  %1539 = vmatpush.bf16.msra.mxu1 %v2754_v35  ;;  %v2744_v11 = vld [vmem:[#allocation7 + $0xa0] sm:$0xff]  ;;  %v2751_v55 = vld [vmem:[#allocation7 + $0xd8] sm:$0xff] }
  0xe8   :  { %1526 = vmatpush.bf16.msra.mxu0 %v2746_v37  ;;  %v2752_v0 = vld [vmem:[#allocation7 + $0xe0] sm:$0xff]  ;;  %v431_v13 = vadd.f32 %v425_v63, %v3419_v50  ;;  %v3662_v50 = vsel %vm402_vm4, %v3501_v15, %v3585_v14  ;;  %v4067_v37 = vld [vmem:[#allocation20_spill] sm:$0xff] }
  0xe9   :  { %v3622_v34 = vadd.f32 %v294_v57, %v240_v6  ;;  %v3624_v53 = vadd.f32 %v307_v44, %v253_v42  ;;  %v3626_v26 = vadd.f32 %v320_v4, %v266_v3  ;;  %v290_v44 = vmul.f32 %v3387_v58, %v3248_v27  ;;  %v4068_v63 = vld [vmem:[#allocation16_spill] sm:$0xff] }
  0xea   :  { %v491_v4 = vadd.f32 %v485_v52, %v431_v13  ;;  %v350_v42 = vmul.f32 %v3381_v56, %v3276_v43  ;;  %v291_v35 = vmul.f32 %v3387_v58, %v4067_v37 }
  0xeb   :  { %v3628_v28 = vpop.permute.xlu1 %220  ;;  %1540 = vmatpush.bf16.msra.mxu1 %v2753_v19  ;;  %v296_v52 = vadd.f32 %v290_v44, %v4068_v63  ;;  %v4072_v44 = vld [vmem:[#allocation19_spill] sm:$0xff]  ;;  %v3707_v46 = vpop.permute.xlu2 %340 }
  0xec   :  { %v515_v31 = vpop.permute.xlu0 %514  ;;  %1527 = vmatpush.bf16.msra.mxu0 %v2745_v60 }
  0xed   :  { %v3637_v5 = vsel %vm522_vm6, %v3405_v38, %v515_v31  ;;  %v3650_v38 = vsel %vm342_vm3, %v3318_v23, %v3515_v7  ;;  %v2743_v23 = vld [vmem:[#allocation7 + $0x98] sm:$0xff]  ;;  %v356_v63 = vadd.f32 %v350_v42, %v296_v52  ;;  %v3715_v42 = vstv %s3656_s1 }
  0xee   :  { %4065 = vst [vmem:[#allocation40_spill] sm:$0xff] %v3637_v5  ;;  %v558_v41 = vmul.f32 %v3449_v40, %v3637_v5  ;;  %v545_v8 = vmul.f32 %v3528_v51, %v3637_v5  ;;  %v366_v27 = vmul.f32 %v3398_v62, %v3650_v38  ;;  %v2750_v40 = vld [vmem:[#allocation7 + $0xd0] sm:$0xff] }
  0xef   :  { %1541 = vmatpush.bf16.msra.mxu1 %v2752_v0  ;;  %v4069_v0 = vld [vmem:[#allocation35_spill] sm:$0xff]  ;;  %v4075_v5 = vld [vmem:[#allocation25_spill] sm:$0xff] }
  0xf0   :  { %v564_v57 = vadd.f32 %v558_v41, %v504_v16  ;;  %1528 = vmatpush.bf16.msra.mxu0 %v2744_v11  ;;  %v3666_v16 = vstv %s2124_s12  ;;  %v551_v19 = vadd.f32 %v545_v8, %v491_v4  ;;  %v3687_v41 = vstv %s3632_s13 }
  0xf1   :  { %v410_v11 = vmul.f32 %v3666_v16, %v3362_v24  ;;  %v3697_v13 = vsel %vm462_vm5, %v3573_v54, %v4069_v0  ;;  %v351_v4 = vmul.f32 %v3381_v56, %v4072_v44  ;;  %v2742_v24 = vld [vmem:[#allocation7 + $0x90] sm:$0xff]  ;;  %v470_v54 = vmul.f32 %v3687_v41, %v4075_v5  ;;  %v2749_v44 = vld [vmem:[#allocation7 + $0xc8] sm:$0xff] }
  0xf2   :  { %4070 = vst [vmem:[#allocation20_spill] sm:$0xff] %v3697_v13  ;;  %v3722_v5 = vstv %s3670_s14 }
  0xf3   :  { %v575_v6 = vpop.permute.xlu1 %574  ;;  %1542 = vmatpush.bf16.msra.mxu1 %v2751_v55  ;;  %v2763_v55 = vld [vmem:[#allocation7 + $0x138] sm:$0xff] }
  0xf4   :  { %v3675_v3 = vsel %vm582_vm7, %v3507_v49, %v575_v6  ;;  %v3677_v15 = vpop.permute.xlu0 %516  ;;  %v426_v49 = vmul.f32 %v3499_v59, %v3662_v50  ;;  %1529 = vmatpush.bf16.msra.mxu0 %v2743_v23 }
  0xf5   :  { %4066 = vst [vmem:[#allocation41_spill] sm:$0xff] %v3675_v3  ;;  %v605_v43 = vmul.f32 %v3543_v36, %v3675_v3  ;;  %v618_v60 = vmul.f32 %v3546_v1, %v3675_v3  ;;  %v372_v1 = vadd.f32 %v366_v27, %v4073_v2  ;;  %v297_v3 = vadd.f32 %v291_v35, %v4074_v22 }
  0xf6   :  { %v486_v2 = vmul.f32 %v3520_v45, %v3697_v13 }
  0xf7   :  { %v3699_v37 = vadd.f32 %v618_v60, %v564_v57  ;;  %v611_v8 = vadd.f32 %v605_v43, %v551_v19  ;;  %v3712_v57 = vsel %vm522_vm6, %v515_v31, %v3677_v15  ;;  %v432_v27 = vadd.f32 %v426_v49, %v372_v1  ;;  %1543 = vmatpush.bf16.msra.mxu1 %v2750_v40  ;;  %v4078_v49 = vld [vmem:[#allocation31_spill] sm:$0xff] }
  0xf8   :  { %4076 = vst [vmem:[#allocation35_spill] sm:$0xff] %v3712_v57  ;;  %v416_v43 = vadd.f32 %v410_v11, %v356_v63  ;;  %1530 = vmatpush.bf16.msra.mxu0 %v2742_v24  ;;  %v546_v60 = vmul.f32 %v3528_v51, %v3712_v57  ;;  %v357_v52 = vadd.f32 %v351_v4, %v297_v3  ;;  %v3736_v63 = vld [vmem:[%s3994_s0 + $0x28] sm:$0xff]  ;;  %v2762_v3 = vld [vmem:[#allocation7 + $0x130] sm:$0xff]  ;;  %v2748_v57 = vld [vmem:[#allocation7 + $0xc0] sm:$0xff] }
  0xf9   :  { %4071 = vst [vmem:[#allocation16_spill] sm:$0xff] %v3699_v37  ;;  %v738_v23 = vmax.f32 %v611_v8, 0.0  ;;  %v530_v11 = vmul.f32 %v3715_v42, %v4078_v49  ;;  %v2741_v8 = vld [vmem:[#allocation7 + $0x88] sm:$0xff]  ;;  %v126_v24 = vmul.f32 %v3736_v63, %v3155_v18  ;;  %v492_v4 = vadd.f32 %v486_v2, %v432_v27  ;;  %v2740_v49 = vld [vmem:[#allocation7 + $0x80] sm:$0xff]  ;;  %v4080_v37 = vld [vmem:[#allocation22_spill] sm:$0xff] }
  0xfa   :  { %v476_v1 = vadd.f32 %v470_v54, %v416_v43  ;;  %v4079_v54 = vld [vmem:[#allocation36_spill] sm:$0xff]  ;;  %v3751_v43 = vsel %vm162_vm1, %v3451_v10, %v3614_v61  ;;  %v4082_v27 = vld [vmem:[#allocation18_spill] sm:$0xff]  ;;  %v3764_v10 = vsel %vm222_vm0, %v3608_v39, %v3628_v28  ;;  %v459_v28 = vpop.permute.xlu2 %458 }
  0xfb   :  { %v3719_v22 = vpop.permute.xlu1 %576  ;;  %v744_v35 = vpack.c.bf16 %v738_v23, %v738_v23  ;;  %v590_v23 = vmul.f32 %v3722_v5, %v4079_v54  ;;  %1544 = vmatpush.bf16.msra.mxu1 %v2749_v44  ;;  %v113_v44 = vmul.f32 %v3736_v63, %v3153_v17 }
  0xfc   :  { %v3729_v31 = vsel %vm582_vm7, %v575_v6, %v3719_v22  ;;  %v339_v19 = vpop.permute.xlu0 %338  ;;  %1531 = vmatpush.bf16.msra.mxu0 %v2741_v8  ;;  %v536_v13 = vadd.f32 %v530_v11, %v476_v1  ;;  %v2761_v11 = vld [vmem:[#allocation7 + $0x128] sm:$0xff] }
  0xfd   :  { %4077 = vst [vmem:[#allocation19_spill] sm:$0xff] %v3729_v31  ;;  %1167 = vmatmul.bf16.vlgmr.msra.gmra.mxu2 %v744_v35  ;;  %v606_v6 = vmul.f32 %v3543_v36, %v3729_v31  ;;  %v344_v40 = vsel %vm342_vm3, %v3515_v7, %v339_v19  ;;  %v411_v7 = vmul.f32 %v3666_v16, %v4080_v37 }
  0xfe   :  { %1551 = vmatpush.bf16.msra.mxu2 %v2763_v55  ;;  %v354_v18 = vmul.f32 %v3381_v56, %v344_v40  ;;  %v367_v35 = vmul.f32 %v3398_v62, %v344_v40  ;;  %v4081_v55 = vld [vmem:[#allocation32_spill] sm:$0xff]  ;;  %v380_v54 = vmul.f32 %v4082_v27, %v344_v40  ;;  %v552_v31 = vadd.f32 %v546_v60, %v492_v4 }
  0xff   :  { %v471_v2 = vmul.f32 %v3687_v41, %v4081_v55  ;;  %v132_v37 = vadd.f32 %v126_v24, %v3184_v30  ;;  %v188_v55 = vmul.f32 %v3196_v33, %v3751_v43  ;;  %v596_v39 = vadd.f32 %v590_v23, %v536_v13  ;;  %1545 = vmatpush.bf16.msra.mxu1 %v2748_v57  ;;  %v4083_v33 = vld [vmem:[#allocation30_spill] sm:$0xff] }
 0x100   :  { %v360_v61 = vadd.f32 %v354_v18, %v3622_v34  ;;  %v373_v8 = vadd.f32 %v367_v35, %v3624_v53  ;;  %v3772_v60 = vadd.f32 %v380_v54, %v3626_v26  ;;  %v612_v1 = vadd.f32 %v606_v6, %v552_v31  ;;  %1532 = vmatpush.bf16.msra.mxu0 %v2740_v49  ;;  %v2760_v6 = vld [vmem:[#allocation7 + $0x120] sm:$0xff]  ;;  %v2759_v54 = vld [vmem:[#allocation7 + $0x118] sm:$0xff] }
 0x101   :  { %v417_v34 = vadd.f32 %v411_v7, %v357_v52  ;;  %v248_v53 = vmul.f32 %v3170_v25, %v3764_v10  ;;  %v3782_v26 = vsel %vm282_vm2, %v3599_v48, %v3639_v47  ;;  %v531_v17 = vmul.f32 %v3715_v42, %v4083_v33  ;;  %v2771_v52 = vld [vmem:[#allocation7 + $0x178] sm:$0xff] }
 0x102   :  { %1552 = vmatpush.bf16.msra.mxu2 %v2762_v3  ;;  %v739_v40 = vmax.f32 %v612_v1, 0.0  ;;  %v194_v13 = vadd.f32 %v188_v55, %v132_v37  ;;  %v119_v25 = vadd.f32 %v113_v44, %v3182_v29  ;;  %v3790_v57 = vsel %vm342_vm3, %v339_v19, %v3707_v46  ;;  %v4084_v29 = vld [vmem:[#allocation34_spill] sm:$0xff]  ;;  %v2770_v19 = vld [vmem:[#allocation7 + $0x170] sm:$0xff]  ;;  %v521_v7 = vpop.permute.xlu2 %520 }
 0x103   :  { %v401_v30 = vpop.permute.xlu1 %400  ;;  %v477_v31 = vadd.f32 %v471_v2, %v417_v34  ;;  %v628_v4 = vmax.f32 %v596_v39, 0.0  ;;  %v308_v48 = vmul.f32 %v3389_v12, %v3782_v26  ;;  %v175_v47 = vmul.f32 %v3193_v32, %v3751_v43 }
 0x104   :  { %v399_v24 = vpop.permute.xlu0 %398  ;;  %v745_v3 = vpack.c.bf16 %v739_v40, %v739_v40  ;;  %v254_v23 = vadd.f32 %v248_v53, %v194_v13  ;;  %v591_v35 = vmul.f32 %v3722_v5, %v4084_v29  ;;  %v235_v12 = vmul.f32 %v3161_v21, %v3764_v10  ;;  %v2757_v29 = vld [vmem:[#allocation7 + $0x108] sm:$0xff] }
 0x105   :  { %v3799_v18 = vsel %vm402_vm4, %v3585_v14, %v399_v24  ;;  %v3805_v46 = vsel %vm402_vm4, %v399_v24, %v401_v30  ;;  %v368_v32 = vmul.f32 %v3398_v62, %v3790_v57  ;;  %v634_v2 = vpack.c.bf16 %v628_v4, %v628_v4  ;;  %v2768_v4 = vld [vmem:[#allocation7 + $0x160] sm:$0xff] }
 0x106   :  { %1553 = vmatpush.bf16.msra.mxu2 %v2761_v11  ;;  %1180 = vmatmul.bf16.vlgmr.msra.gmra.mxu3 %v745_v3  ;;  %v414_v14 = vmul.f32 %v3666_v16, %v3799_v18  ;;  %v427_v49 = vmul.f32 %v3499_v59, %v3799_v18  ;;  %v537_v37 = vadd.f32 %v531_v17, %v477_v31 }
 0x107   :  { %1564 = vmatpush.bf16.msra.mxu3 %v2771_v52  ;;  %v181_v55 = vadd.f32 %v175_v47, %v119_v25  ;;  %v314_v1 = vadd.f32 %v308_v48, %v254_v23  ;;  %v428_v21 = vmul.f32 %v3499_v59, %v3805_v46  ;;  %v295_v44 = vmul.f32 %v3387_v58, %v3782_v26  ;;  %v2769_v58 = vld [vmem:[#allocation7 + $0x168] sm:$0xff] }
 0x108   :  { %v597_v34 = vadd.f32 %v591_v35, %v537_v37  ;;  %v3826_v53 = vsel %vm462_vm5, %v4069_v0, %v459_v28  ;;  %v420_v40 = vadd.f32 %v414_v14, %v360_v61  ;;  %v433_v33 = vadd.f32 %v427_v49, %v373_v8  ;;  %v2758_v0 = vld [vmem:[#allocation7 + $0x110] sm:$0xff] }
 0x109   :  { %v241_v30 = vadd.f32 %v235_v12, %v181_v55  ;;  %v374_v24 = vadd.f32 %v368_v32, %v314_v1  ;;  %v487_v61 = vmul.f32 %v3520_v45, %v3826_v53  ;;  %v415_v48 = vmul.f32 %v3666_v16, %v3805_v46  ;;  %v2767_v1 = vld [vmem:[#allocation7 + $0x158] sm:$0xff] }
 0x10a   :  { %1554 = vmatpush.bf16.msra.mxu2 %v2760_v6 }
 0x10b   :  { %v519_v11 = vpop.permute.xlu1 %518  ;;  %1565 = vmatpush.bf16.msra.mxu3 %v2770_v19  ;;  %v434_v13 = vadd.f32 %v428_v21, %v374_v24  ;;  %v301_v6 = vadd.f32 %v295_v44, %v241_v30  ;;  %v493_v23 = vadd.f32 %v487_v61, %v433_v33  ;;  %v353_v21 = vmul.f32 %v3381_v56, %v3650_v38 }
 0x10c   :  { %v461_v62 = vpop.permute.xlu0 %460  ;;  %v3831_v59 = vsel %vm522_vm6, %v3677_v15, %v519_v11  ;;  %v3837_v31 = vsel %vm522_vm6, %v519_v11, %v521_v7  ;;  %v474_v15 = vmul.f32 %v3687_v41, %v3826_v53 }
 0x10d   :  { %v3821_v39 = vsel %vm462_vm5, %v459_v28, %v461_v62  ;;  %1507 = vmatmul.bf16.vlgmr.msrb.gmra.mxu2 %v634_v2  ;;  %v355_v28 = vmul.f32 %v3381_v56, %v3790_v57  ;;  %v534_v8 = vmul.f32 %v3715_v42, %v3831_v59  ;;  %v547_v52 = vmul.f32 %v3528_v51, %v3831_v59 }
 0x10e   :  { %v488_v17 = vmul.f32 %v3520_v45, %v3821_v39  ;;  %1555 = vmatpush.bf16.msra.mxu2 %v2759_v54  ;;  %v548_v3 = vmul.f32 %v3528_v51, %v3837_v31  ;;  %v480_v47 = vadd.f32 %v474_v15, %v420_v40  ;;  %v629_v45 = vmax.f32 %v597_v34, 0.0  ;;  %v2843_v34 = vld [vmem:[#allocation7 + $0x3b8] sm:$0xff] }
 0x10f   :  { %1566 = vmatpush.bf16.msra.mxu3 %v2769_v58  ;;  %v361_v35 = vadd.f32 %v355_v28, %v301_v6  ;;  %v475_v12 = vmul.f32 %v3687_v41, %v3821_v39  ;;  %v553_v49 = vadd.f32 %v547_v52, %v493_v23  ;;  %v413_v58 = vmul.f32 %v3666_v16, %v3662_v50 }
 0x110   :  { %v494_v25 = vadd.f32 %v488_v17, %v434_v13  ;;  %v540_v14 = vadd.f32 %v534_v8, %v480_v47  ;;  %v635_v62 = vpack.c.bf16 %v629_v45, %v629_v45  ;;  %v535_v33 = vmul.f32 %v3715_v42, %v3837_v31  ;;  %v2766_v17 = vld [vmem:[#allocation7 + $0x150] sm:$0xff]  ;;  %v4085_v13 = vld [vmem:[#allocation26_spill] sm:$0xff]  ;;  %v4086_v8 = vld [vmem:[#allocation39_spill] sm:$0xff] }
 0x111   :  { %v421_v11 = vadd.f32 %v415_v48, %v361_v35  ;;  %v359_v15 = vadd.f32 %v353_v21, %v4085_v13  ;;  %v472_v52 = vmul.f32 %v3687_v41, %v4086_v8  ;;  %v2842_v45 = vld [vmem:[#allocation7 + $0x3b0] sm:$0xff]  ;;  %v2832_v13 = vld [vmem:[#allocation7 + $0x360] sm:$0xff]  ;;  %v2849_v8 = vld [vmem:[#allocation7 + $0x3e8] sm:$0xff] }
 0x112   :  { %1556 = vmatpush.bf16.msra.mxu2 %v2758_v0  ;;  %v554_v2 = vadd.f32 %v548_v3, %v494_v25 }
 0x113   :  { %v581_v32 = vpop.permute.xlu1 %580  ;;  %1567 = vmatpush.bf16.msra.mxu3 %v2768_v4  ;;  %v481_v40 = vadd.f32 %v475_v12, %v421_v11  ;;  %v2827_v4 = vld [vmem:[#allocation7 + $0x338] sm:$0xff]  ;;  %v419_v47 = vadd.f32 %v413_v58, %v359_v15  ;;  %v4089_v12 = vld [vmem:[#allocation40_spill] sm:$0xff]  ;;  %v4092_v11 = vld [vmem:[#allocation19_spill] sm:$0xff] }
 0x114   :  { %v579_v19 = vpop.permute.xlu0 %578 }
 0x115   :  { %v3857_v51 = vsel %vm582_vm7, %v579_v19, %v581_v32  ;;  %v3862_v7 = vsel %vm582_vm7, %v3719_v22, %v579_v19  ;;  %v2756_v22 = vld [vmem:[#allocation7 + $0x100] sm:$0xff]  ;;  %v541_v23 = vadd.f32 %v535_v33, %v481_v40  ;;  %v532_v32 = vmul.f32 %v3715_v42, %v4089_v12  ;;  %v2765_v19 = vld [vmem:[#allocation7 + $0x148] sm:$0xff] }
 0x116   :  { %v594_v54 = vmul.f32 %v3722_v5, %v3862_v7  ;;  %v607_v37 = vmul.f32 %v3543_v36, %v3862_v7  ;;  %v608_v55 = vmul.f32 %v3543_v36, %v3857_v51  ;;  %1557 = vmatpush.bf16.msra.mxu2 %v2757_v29  ;;  %1520 = vmatmul.bf16.vlgmr.msrb.gmra.mxu3 %v635_v62  ;;  %v4088_v29 = vld [vmem:[#allocation23_spill] sm:$0xff]  ;;  %v2825_v40 = vld [vmem:[#allocation7 + $0x328] sm:$0xff] }
 0x117   :  { %v412_v36 = vmul.f32 %v3666_v16, %v3513_v20  ;;  %1568 = vmatpush.bf16.msra.mxu3 %v2767_v1  ;;  %v595_v61 = vmul.f32 %v3722_v5, %v3857_v51  ;;  %v2835_v20 = vld [vmem:[#allocation7 + $0x378] sm:$0xff]  ;;  %v4087_v16 = vld [vmem:[#allocation20_spill] sm:$0xff]  ;;  %v2834_v1 = vld [vmem:[#allocation7 + $0x370] sm:$0xff]  ;;  %v593_v62 = vmul.f32 %v3722_v5, %v4092_v11 }
 0x118   :  { %v600_v44 = vadd.f32 %v594_v54, %v540_v14  ;;  %v613_v30 = vadd.f32 %v607_v37, %v553_v49  ;;  %v614_v24 = vadd.f32 %v608_v55, %v554_v2  ;;  %v473_v48 = vmul.f32 %v3687_v41, %v4087_v16  ;;  %v4090_v14 = vld [vmem:[#allocation35_spill] sm:$0xff]  ;;  %v4091_v37 = vld [vmem:[#allocation41_spill] sm:$0xff]  ;;  %v2833_v33 = vld [vmem:[#allocation7 + $0x368] sm:$0xff] }
 0x119   :  { %v418_v35 = vadd.f32 %v412_v36, %v4088_v29  ;;  %v533_v49 = vmul.f32 %v3715_v42, %v4090_v14  ;;  %v601_v2 = vadd.f32 %v595_v61, %v541_v23  ;;  %v592_v41 = vmul.f32 %v3722_v5, %v4091_v37  ;;  %v2826_v55 = vld [vmem:[#allocation7 + $0x330] sm:$0xff]  ;;  %v2764_v42 = vld [vmem:[#allocation7 + $0x140] sm:$0xff]  ;;  %v2839_v61 = vld [vmem:[#allocation7 + $0x398] sm:$0xff] }
 0x11a   :  { %v632_v56 = vmax.f32 %v600_v44, 0.0  ;;  %v740_v0 = vmax.f32 %v613_v30, 0.0  ;;  %v741_v28 = vmax.f32 %v614_v24, 0.0  ;;  %1558 = vmatpush.bf16.msra.mxu2 %v2756_v22  ;;  %v479_v21 = vadd.f32 %v473_v48, %v419_v47  ;;  %v2841_v22 = vld [vmem:[#allocation7 + $0x3a8] sm:$0xff]  ;;  %v2851_v24 = vld [vmem:[#allocation7 + $0x3f8] sm:$0xff]  ;;  %v2850_v5 = vld [vmem:[#allocation7 + $0x3f0] sm:$0xff] }
 0x11b   :  { %1569 = vmatpush.bf16.msra.mxu3 %v2766_v17  ;;  %v478_v54 = vadd.f32 %v472_v52, %v418_v35  ;;  %v633_v30 = vmax.f32 %v601_v2, 0.0  ;;  %v2848_v48 = vld [vmem:[#allocation7 + $0x3e0] sm:$0xff]  ;;  %v4093_v47 = vld [vmem:[#allocation21_spill] sm:$0xff]  ;;  %v2837_v35 = vld [vmem:[#allocation7 + $0x388] sm:$0xff] }
 0x11c   :  { %v638_v6 = vpack.c.bf16 %v632_v56, %v632_v56  ;;  %v746_v25 = vpack.c.bf16 %v740_v0, %v740_v0  ;;  %v747_v3 = vpack.c.bf16 %v741_v28, %v741_v28  ;;  %v2840_v56 = vld [vmem:[#allocation7 + $0x3a0] sm:$0xff]  ;;  %v439_v23 = vmul.f32 %v4093_v47, %v3662_v50  ;;  %v2830_v29 = vld [vmem:[#allocation7 + $0x350] sm:$0xff]  ;;  %v4094_v12 = vld [vmem:[#allocation28_spill] sm:$0xff] }
 0x11d   :  { %v538_v44 = vadd.f32 %v532_v32, %v478_v54  ;;  %v639_v17 = vpack.c.bf16 %v633_v30, %v633_v30  ;;  %v2824_v28 = vld [vmem:[#allocation7 + $0x320] sm:$0xff]  ;;  %v2821_v54 = vld [vmem:[#allocation7 + $0x308] sm:$0xff]  ;;  %v4099_v30 = vld [vmem:[#allocation38_spill] sm:$0xff] }
 0x11e   :  { %2000 = vmatpush.bf16.msrb.mxu2 %v2843_v34  ;;  %1193 = vmatmul.bf16.vlgmr.msrb.gmra.mxu0 %v746_v25  ;;  %v539_v34 = vadd.f32 %v533_v49, %v479_v21  ;;  %v2831_v25 = vld [vmem:[#allocation7 + $0x358] sm:$0xff]  ;;  %v4095_v49 = vld [vmem:[#allocation24_spill] sm:$0xff]  ;;  %v2836_v50 = vld [vmem:[#allocation7 + $0x380] sm:$0xff] }
 0x11f   :  { %1206 = vmatmul.bf16.vlgmr.msrb.gmra.mxu1 %v747_v3  ;;  %1559 = vmatmul.bf16.vlgmr.msra.gmra.mxu2 %v638_v6  ;;  %v598_v58 = vadd.f32 %v592_v41, %v538_v44  ;;  %v2823_v6 = vld [vmem:[#allocation7 + $0x318] sm:$0xff]  ;;  %v2829_v37 = vld [vmem:[#allocation7 + $0x348] sm:$0xff]  ;;  %v4096_v41 = vld [vmem:[#allocation29_spill] sm:$0xff] }
 0x120   :  { %1974 = vmatpush.bf16.msrb.mxu0 %v2827_v4  ;;  %1987 = vmatpush.bf16.msrb.mxu1 %v2835_v20  ;;  %v599_v36 = vadd.f32 %v593_v62, %v539_v34  ;;  %v2838_v4 = vld [vmem:[#allocation7 + $0x390] sm:$0xff]  ;;  %v379_v20 = vmul.f32 %v4082_v27, %v3650_v38  ;;  %v499_v38 = vmul.f32 %v4095_v49, %v4087_v16  ;;  %v2820_v16 = vld [vmem:[#allocation7 + $0x300] sm:$0xff] }
 0x121   :  { %1570 = vmatpush.bf16.msra.mxu3 %v2765_v19  ;;  %v630_v0 = vmax.f32 %v598_v58, 0.0  ;;  %v2847_v19 = vld [vmem:[#allocation7 + $0x3d8] sm:$0xff]  ;;  %v2846_v62 = vld [vmem:[#allocation7 + $0x3d0] sm:$0xff]  ;;  %v2828_v34 = vld [vmem:[#allocation7 + $0x340] sm:$0xff] }
 0x122   :  { %2001 = vmatpush.bf16.msrb.mxu2 %v2842_v45  ;;  %v631_v15 = vmax.f32 %v599_v36, 0.0  ;;  %v2822_v45 = vld [vmem:[#allocation7 + $0x310] sm:$0xff]  ;;  %v385_v32 = vadd.f32 %v379_v20, %v4094_v12  ;;  %v4100_v58 = vld [vmem:[#allocation11_spill] sm:$0xff] }
 0x123   :  { %v636_v52 = vpack.c.bf16 %v630_v0, %v630_v0  ;;  %v4098_v44 = vld [vmem:[#allocation33_spill] sm:$0xff]  ;;  %v2845_v0 = vld [vmem:[#allocation7 + $0x3c8] sm:$0xff] }
 0x124   :  { %1975 = vmatpush.bf16.msrb.mxu0 %v2826_v55  ;;  %1988 = vmatpush.bf16.msrb.mxu1 %v2834_v1  ;;  %v637_v3 = vpack.c.bf16 %v631_v15, %v631_v15  ;;  %v445_v2 = vadd.f32 %v439_v23, %v385_v32  ;;  %v559_v55 = vmul.f32 %v4096_v41, %v4090_v14  ;;  %v4097_v1 = vld [vmem:[#allocation16_spill] sm:$0xff]  ;;  %v4101_v14 = vld [vmem:[#allocation37_spill] sm:$0xff] }
 0x125   :  { %1571 = vmatpush.bf16.msra.mxu3 %v2764_v42  ;;  %v1579_v21 = vmax.f32 %v4097_v1, 0.0  ;;  %v619_v42 = vmul.f32 %v4098_v44, %v4092_v11  ;;  %v1578_v36 = vmax.f32 %v4101_v14, 0.0  ;;  %v2857_v23 = vld [vmem:[#allocation7 + $0x428] sm:$0xff]  ;;  %v381_v32 = vmul.f32 %v4082_v27, %v3790_v57  ;;  %v2863_v57 = vld [vmem:[#allocation7 + $0x458] sm:$0xff] }
 0x126   :  { %2002 = vmatpush.bf16.msrb.mxu2 %v2841_v22  ;;  %v505_v22 = vadd.f32 %v499_v38, %v445_v2  ;;  %v2864_v38 = vld [vmem:[#allocation7 + $0x460] sm:$0xff]  ;;  %v560_v1 = vmul.f32 %v4096_v41, %v3831_v59 }
 0x128   :  { %1976 = vmatpush.bf16.msrb.mxu0 %v2825_v40  ;;  %1989 = vmatpush.bf16.msrb.mxu1 %v2833_v33  ;;  %v139_v40 = vmul.f32 %v3736_v63, %v4100_v58  ;;  %v2859_v33 = vld [vmem:[#allocation7 + $0x438] sm:$0xff]  ;;  %v2858_v63 = vld [vmem:[#allocation7 + $0x430] sm:$0xff] }
 0x129   :  { %2013 = vmatpush.bf16.msrb.mxu3 %v2851_v24  ;;  %v1577_v24 = vmax.f32 %v4099_v30, 0.0  ;;  %v2860_v30 = vld [vmem:[#allocation7 + $0x440] sm:$0xff] }
 0x12a   :  { %1572 = vmatmul.bf16.vlgmr.msra.gmra.mxu3 %v639_v17  ;;  %2003 = vmatpush.bf16.msrb.mxu2 %v2840_v56  ;;  %v565_v56 = vadd.f32 %v559_v55, %v505_v22  ;;  %v2867_v17 = vld [vmem:[#allocation7 + $0x478] sm:$0xff]  ;;  %v621_v22 = vmul.f32 %v4098_v44, %v3857_v51 }
 0x12b   :  { %v1583_v11 = vpack.c.bf16 %v1577_v24, %v1577_v24 }
 0x12c   :  { %1977 = vmatpush.bf16.msrb.mxu0 %v2824_v28  ;;  %1990 = vmatpush.bf16.msrb.mxu1 %v2832_v13  ;;  %v625_v28 = vadd.f32 %v619_v42, %v565_v56  ;;  %v4102_v13 = vld [vmem:[#allocation13_spill] sm:$0xff] }
 0x12d   :  { %2014 = vmatpush.bf16.msrb.mxu3 %v2850_v5  ;;  %v1585_v5 = vpack.c.bf16 %v1579_v21, %v1579_v21  ;;  %v145_v15 = vadd.f32 %v139_v40, %v4102_v13 }
 0x12e   :  { %2004 = vmatpush.bf16.msrb.mxu2 %v2839_v61  ;;  %1533 = vmatmul.bf16.vlgmr.msra.gmra.mxu0 %v636_v52  ;;  %v4103_v61 = vld [vmem:[#allocation14_spill] sm:$0xff]  ;;  %v1584_v52 = vpack.c.bf16 %v1578_v36, %v1578_v36  ;;  %v1580_v20 = vmax.f32 %v625_v28, 0.0 }
 0x12f   :  { %1546 = vmatmul.bf16.vlgmr.msra.gmra.mxu1 %v637_v3 }
 0x130   :  { %1978 = vmatpush.bf16.msrb.mxu0 %v2823_v6  ;;  %1991 = vmatpush.bf16.msrb.mxu1 %v2831_v25  ;;  %v2866_v6 = vld [vmem:[#allocation7 + $0x470] sm:$0xff]  ;;  %v4104_v25 = vld [vmem:[#allocation12_spill] sm:$0xff]  ;;  %v1586_v12 = vpack.c.bf16 %v1580_v20, %v1580_v20 }
 0x131   :  { %2015 = vmatpush.bf16.msrb.mxu3 %v2849_v8  ;;  %v201_v8 = vmul.f32 %v4103_v61, %v3751_v43  ;;  %v261_v3 = vmul.f32 %v4104_v25, %v3764_v10  ;;  %v4105_v43 = vld [vmem:[#allocation15_spill] sm:$0xff] }
 0x132   :  { %2005 = vmatpush.bf16.msrb.mxu2 %v2838_v4  ;;  %v2844_v4 = vld [vmem:[#allocation7 + $0x3c0] sm:$0xff] }
 0x133   :  { %v2856_v10 = vld [vmem:[#allocation7 + $0x420] sm:$0xff] }
 0x134   :  { %1979 = vmatpush.bf16.msrb.mxu0 %v2822_v45  ;;  %1992 = vmatpush.bf16.msrb.mxu1 %v2830_v29  ;;  %v2865_v45 = vld [vmem:[#allocation7 + $0x468] sm:$0xff]  ;;  %v321_v29 = vmul.f32 %v4105_v43, %v3782_v26  ;;  %v501_v26 = vmul.f32 %v4095_v49, %v3821_v39 }
 0x135   :  { %2016 = vmatpush.bf16.msrb.mxu3 %v2848_v48  ;;  %v207_v48 = vadd.f32 %v201_v8, %v145_v15  ;;  %v2072_v43 = vld [vmem:[%s3999_s5 + $0x68] sm:$0xff] }
 0x136   :  { %2006 = vmatpush.bf16.msrb.mxu2 %v2837_v35 }
 0x137   :  { %v267_v35 = vadd.f32 %v261_v3, %v207_v48  ;;  %v2074_v48 = vld [vmem:[%s3999_s5 + $0x78] sm:$0xff] }
 0x138   :  { %1980 = vmatpush.bf16.msrb.mxu0 %v2821_v54  ;;  %1993 = vmatpush.bf16.msrb.mxu1 %v2829_v37  ;;  %v441_v54 = vmul.f32 %v4093_v47, %v3805_v46  ;;  %v561_v46 = vmul.f32 %v4096_v41, %v3837_v31  ;;  %v2852_v31 = vld [vmem:[#allocation7 + $0x400] sm:$0xff] }
 0x139   :  { %2017 = vmatpush.bf16.msrb.mxu3 %v2847_v19  ;;  %v440_v19 = vmul.f32 %v4093_v47, %v3799_v18  ;;  %v327_v2 = vadd.f32 %v321_v29, %v267_v35  ;;  %v500_v18 = vmul.f32 %v4095_v49, %v3826_v53  ;;  %v2854_v47 = vld [vmem:[#allocation7 + $0x410] sm:$0xff]  ;;  %v2853_v49 = vld [vmem:[#allocation7 + $0x408] sm:$0xff] }
 0x13a   :  { %2007 = vmatpush.bf16.msrb.mxu2 %v2836_v50  ;;  %v2855_v50 = vld [vmem:[#allocation7 + $0x418] sm:$0xff] }
 0x13b   :  { %v387_v37 = vadd.f32 %v381_v32, %v327_v2  ;;  %v446_v27 = vadd.f32 %v440_v19, %v3772_v60  ;;  %v2862_v60 = vld [vmem:[#allocation7 + $0x450] sm:$0xff]  ;;  %v2071_v32 = vld [vmem:[%s3999_s5 + $0x60] sm:$0xff] }
 0x13c   :  { %1981 = vmatpush.bf16.msrb.mxu0 %v2820_v16  ;;  %1994 = vmatpush.bf16.msrb.mxu1 %v2828_v34  ;;  %v2861_v16 = vld [vmem:[#allocation7 + $0x448] sm:$0xff]  ;;  %v2069_v19 = vld [vmem:[%s3999_s5 + $0x50] sm:$0xff] }
 0x13d   :  { %2018 = vmatpush.bf16.msrb.mxu3 %v2846_v62  ;;  %2008 = vmatmul.bf16.vlgmr.msrb.gmra.mxu2 %v1585_v5  ;;  %v447_v55 = vadd.f32 %v441_v54, %v387_v37  ;;  %v506_v39 = vadd.f32 %v500_v18, %v446_v27  ;;  %v620_v62 = vmul.f32 %v4098_v44, %v3862_v7  ;;  %v2065_v27 = vld [vmem:[%s3999_s5 + $0x30] sm:$0xff] }
 0x13e   :  { %2079 = vmatpush.msra.mxu2 %v2074_v48 }
 0x13f   :  { %1982 = vmatmul.bf16.vlgmr.msrb.gmra.mxu0 %v1583_v11  ;;  %1995 = vmatmul.bf16.vlgmr.msrb.gmra.mxu1 %v1584_v52  ;;  %v507_v21 = vadd.f32 %v501_v26, %v447_v55  ;;  %v566_v42 = vadd.f32 %v560_v1, %v506_v39  ;;  %v2067_v26 = vld [vmem:[%s3999_s5 + $0x40] sm:$0xff]  ;;  %v2064_v55 = vld [vmem:[%s3999_s5 + $0x28] sm:$0xff] }
 0x140   :  { %2026 = vmatpush.bf16.msra.mxu0 %v2859_v33  ;;  %2039 = vmatpush.bf16.msra.mxu1 %v2867_v17  ;;  %v2063_v1 = vld [vmem:[%s3999_s5 + $0x20] sm:$0xff]  ;;  %v2060_v39 = vld [vmem:[%s3999_s5 + $0x8] sm:$0xff] }
 0x141   :  { %2019 = vmatpush.bf16.msrb.mxu3 %v2845_v0  ;;  %v567_v53 = vadd.f32 %v561_v46, %v507_v21  ;;  %v626_v59 = vadd.f32 %v620_v62, %v566_v42  ;;  %v2062_v46 = vld [vmem:[%s3999_s5 + $0x18] sm:$0xff] }
 0x143   :  { %v627_v34 = vadd.f32 %v621_v22, %v567_v53  ;;  %v1581_v41 = vmax.f32 %v626_v59, 0.0 }
 0x144   :  { %2027 = vmatpush.bf16.msra.mxu0 %v2858_v63  ;;  %2040 = vmatpush.bf16.msra.mxu1 %v2866_v6 }
 0x145   :  { %2020 = vmatpush.bf16.msrb.mxu3 %v2844_v4  ;;  %v1582_v24 = vmax.f32 %v627_v34, 0.0  ;;  %v1587_v7 = vpack.c.bf16 %v1581_v41, %v1581_v41 }
 0x147   :  { %v1588_v58 = vpack.c.bf16 %v1582_v24, %v1582_v24 }
 0x148   :  { %2028 = vmatpush.bf16.msra.mxu0 %v2857_v23  ;;  %2021 = vmatmul.bf16.vlgmr.msrb.gmra.mxu3 %v1586_v12 }
 0x149   :  { %2041 = vmatpush.bf16.msra.mxu1 %v2865_v45  ;;  %v2073_v45 = vld [vmem:[%s3999_s5 + $0x70] sm:$0xff] }
 0x14a   :  { %2080 = vmatpush.msra.mxu2 %v2073_v45 }
 0x14c   :  { %2029 = vmatpush.bf16.msra.mxu0 %v2856_v10  ;;  %2081 = vmatpush.msra.mxu2 %v2072_v43  ;;  %v2070_v10 = vld [vmem:[%s3999_s5 + $0x58] sm:$0xff] }
 0x14d   :  { %2042 = vmatpush.bf16.msra.mxu1 %v2864_v38  ;;  %v2068_v38 = vld [vmem:[%s3999_s5 + $0x48] sm:$0xff] }
 0x14e   :  { %2082 = vmatpush.msra.mxu2 %v2071_v32 }
 0x150   :  { %2030 = vmatpush.bf16.msra.mxu0 %v2855_v50  ;;  %2083 = vmatpush.msra.mxu2 %v2070_v10  ;;  %v2066_v50 = vld [vmem:[%s3999_s5 + $0x38] sm:$0xff] }
 0x151   :  { %2043 = vmatpush.bf16.msra.mxu1 %v2863_v57 }
 0x152   :  { %2084 = vmatpush.msra.mxu2 %v2069_v19 }
 0x154   :  { %2031 = vmatpush.bf16.msra.mxu0 %v2854_v47  ;;  %2085 = vmatpush.msra.mxu2 %v2068_v38  ;;  %v2061_v47 = vld [vmem:[%s3999_s5 + $0x10] sm:$0xff] }
 0x155   :  { %2044 = vmatpush.bf16.msra.mxu1 %v2862_v60  ;;  %v2059_v60 = vld [vmem:[%s3999_s5] sm:$0xff] }
 0x156   :  { %2086 = vmatpush.msra.mxu2 %v2067_v26 }
 0x158   :  { %2032 = vmatpush.bf16.msra.mxu0 %v2853_v49  ;;  %2087 = vmatpush.msra.mxu2 %v2066_v50 }
 0x159   :  { %2045 = vmatpush.bf16.msra.mxu1 %v2861_v16 }
 0x15a   :  { %2088 = vmatpush.msra.mxu2 %v2065_v27 }
 0x15b   :  { %v1142_v51 = vpop.f32.mrf.mxu0  ;;  %v1155_v44 = vpop.f32.mrf.mxu1 }
 0x15c   :  { %2033 = vmatpush.bf16.msra.mxu0 %v2852_v31  ;;  %v1156_v40 = vadd.f32 %v1155_v44, %v1142_v51  ;;  %2089 = vmatpush.msra.mxu2 %v2064_v55 }
 0x15d   :  { %2046 = vmatpush.bf16.msra.mxu1 %v2860_v30 }
 0x15e   :  { %2090 = vmatpush.msra.mxu2 %v2063_v1 }
 0x15f   :  { %2034 = vmatmul.bf16.vlgmr.msra.gmra.mxu0 %v1587_v7 }
 0x160   :  { %2047 = vmatmul.bf16.vlgmr.msra.gmra.mxu1 %v1588_v58  ;;  %2091 = vmatpush.msra.mxu2 %v2062_v46 }
 0x162   :  { %2092 = vmatpush.msra.mxu2 %v2061_v47 }
 0x163   :  { %v1144_v33 = vpop.f32.mrf.mxu0  ;;  %v1157_v14 = vpop.f32.mrf.mxu1 }
 0x164   :  { %2093 = vmatpush.msra.mxu2 %v2060_v39  ;;  %v2881_v33 = vld [vmem:[%s3998_s4] ss:$0 sm:$0xff] }
 0x166   :  { %2094 = vmatpush.msra.mxu2 %v2059_v60 }
 0x180   :  { %v1168_v36 = vpop.f32.mrf.mxu2 }
 0x181   :  { %v1169_v56 = vadd.f32 %v1168_v36, %v1156_v40 }
 0x188   :  { %v1170_v17 = vpop.f32.mrf.mxu2 }
 0x189   :  { %v1181_v5 = vpop.f32.mrf.mxu3 }
 0x18a   :  { %v1182_v13 = vadd.f32 %v1181_v5, %v1169_v56 }
 0x190   :  { %v1508_v0 = vpop.f32.mrf.mxu2 }
 0x191   :  { %v1183_v28 = vpop.f32.mrf.mxu3 }
 0x198   :  { %v1510_v11 = vpop.f32.mrf.mxu2 }
 0x199   :  { %v1521_v61 = vpop.f32.mrf.mxu3 }
 0x19b   :  { %v1194_v15 = vpop.f32.mrf.mxu0 }
 0x19c   :  { %v1195_v8 = vadd.f32 %v1194_v15, %v1182_v13  ;;  %v1207_v63 = vpop.f32.mrf.mxu1 }
 0x19e   :  { %v1208_v52 = vadd.f32 %v1207_v63, %v1195_v8 }
 0x1a0   :  { %v1509_v6 = vadd.f32 %v1508_v0, %v1208_v52  ;;  %v2882_v0 = vld [vmem:[%s4000_s6] ss:$0 sm:$0xff] }
 0x1a1   :  { %v1523_v4 = vpop.f32.mrf.mxu3 }
 0x1a2   :  { %v1560_v25 = vpop.f32.mrf.mxu2  ;;  %v1522_v49 = vadd.f32 %v1521_v61, %v1509_v6 }
 0x1a3   :  { %v1196_v3 = vpop.f32.mrf.mxu0 }
 0x1a4   :  { %v1209_v20 = vpop.f32.mrf.mxu1 }
 0x1aa   :  { %v1562_v23 = vpop.f32.mrf.mxu2 }
 0x1ab   :  { %v1534_v29 = vpop.f32.mrf.mxu0 }
 0x1ac   :  { %v1547_v12 = vpop.f32.mrf.mxu1  ;;  %v1535_v59 = vadd.f32 %v1534_v29, %v1522_v49 }
 0x1ad   :  { %v1573_v35 = vpop.f32.mrf.mxu3 }
 0x1ae   :  { %v1548_v31 = vadd.f32 %v1547_v12, %v1535_v59 }
 0x1b0   :  { %v1561_v30 = vadd.f32 %v1560_v25, %v1548_v31 }
 0x1b2   :  { %v1574_v44 = vadd.f32 %v1573_v35, %v1561_v30 }
 0x1b3   :  { %v1536_v2 = vpop.f32.mrf.mxu0 }
 0x1b4   :  { %v1549_v37 = vpop.f32.mrf.mxu1 }
 0x1b5   :  { %v1575_v54 = vpop.f32.mrf.mxu3 }
 0x1bc   :  { %v1983_v57 = vpop.f32.mrf.mxu0  ;;  %v1996_v18 = vpop.f32.mrf.mxu1 }
 0x1bd   :  { %v1997_v34 = vadd.f32 %v1996_v18, %v1983_v57 }
 0x1c0   :  { %v2009_v21 = vpop.f32.mrf.mxu2 }
 0x1c1   :  { %v2010_v41 = vadd.f32 %v2009_v21, %v1997_v34 }
 0x1c4   :  { %v1985_v62 = vpop.f32.mrf.mxu0  ;;  %v1998_v22 = vpop.f32.mrf.mxu1 }
 0x1c8   :  { %v2011_v42 = vpop.f32.mrf.mxu2 }
 0x1cb   :  { %v2022_v53 = vpop.f32.mrf.mxu3 }
 0x1cc   :  { %v2023_v24 = vadd.f32 %v2022_v53, %v2010_v41 }
 0x1d3   :  { %v2024_v16 = vpop.f32.mrf.mxu3 }
 0x1dc   :  { %v2035_v7 = vpop.f32.mrf.mxu0 }
 0x1dd   :  { %v2036_v58 = vadd.f32 %v2035_v7, %v2023_v24  ;;  %v2048_v51 = vpop.f32.mrf.mxu1 }
 0x1df   :  { %v2049_v40 = vadd.f32 %v2048_v51, %v2036_v58 }
 0x1e1   :  { %v2052_v14 = vadd.f32 %v2049_v40, %v1574_v44 }
 0x1e3   :  { %v2057_v36 = vadd.f32 %v2881_v33, %v2052_v14 }
 0x1e4   :  { %v2037_v56 = vpop.f32.mrf.mxu0 }
 0x1e5   :  { %v2058_v17 = vmax.f32 %v2057_v36, 0.0  ;;  %v2050_v5 = vpop.f32.mrf.mxu1 }
 0x1e7   :  { %2095 = vmatmul.f32.vlgmr.msra.gmra.mxu2 %v2058_v17 }
 0x26a   :  { %v2096_v28 = vpop.f32.mrf.mxu2 }
 0x26b   :  { %v2097_v11 = vadd.f32 %v2882_v0, %v2096_v28 }
 0x26d   :  { %v2100_v13 = vsel %vm2099_vm8, %v2097_v11, -1e+30 }
 0x26e   :  { %2101 = vmax.xlane.f32.xlu2 %v2100_v13 }
 0x2e1   :  { %v2102_v15 = vpop.xlane.xlu2 %2101 }
 0x2e2   :  { %v2103_v61 = vsub.f32 %v2097_v11, %v2102_v15 }
 0x2e4   :  { %v2104_v8 = vmul.f32 1.442695, %v2103_v61 }
 0x2e6   :  { %2883 = vpow2.f32 %v2104_v8 }
 0x2ec   :  { %v2884_v63 = vpop.eup %2883 }
 0x2ed   :  { %v2106_v52 = vsel %vm2099_vm8, %v2884_v63, 0.0 }
 0x2ee   :  { %2107 = vadd.xlane.f32.xlu0 %v2106_v52 }
 0x361   :  { %v2108_v6 = vpop.xlane.xlu0 %2107 }
 0x362   :  { %2885 = vlog2.f32 %v2108_v6 }
 0x368   :  { %v2886_v25 = vpop.eup %2885 }
 0x369   :  { %v2110_v3 = vmul.f32 0.6931472, %v2886_v25 }
 0x36b   :  { %v2111_v4 = vsub.f32 %v2103_v61, %v2110_v3 }
 0x36d   :  { %2112 = vst [vmem:[%s4001_s7] sm:$0xff] %v2111_v4 }
 0x36e   :  { %2117 = vsyncpa [#allocation3], 1 }
 0x36f   :  { %2118 = vsyncpa [#allocation4], 1 }
 0x370   :  { %2119 = vsyncpa [#allocation6], 1 }

</bundles_post_ra>
